<compile_context>
chip_gen: v6e
topology: v6e:2x2x1
jax: 0.10.0
libtpu: 0.0.40
codegen_flags: <defaults>
</compile_context>

<pallas_src>
import functools

import jax
import jax.numpy as jnp
from jax.experimental import pallas as pl
from jax.experimental.pallas import tpu as pltpu

HIDDEN = 256          # self.hidden_dim
PANEL_OUT = 56        # panel_decoder output dim
RT_OUT = 7            # panel_rt_decoder output dim (4 rot + 3 trans)
HEAD_W = 1 + PANEL_OUT + RT_OUT   # 64 useful output lanes
OUT_W = 128                       # lane-padded fused output width


def garment_kernel(
    x_ref,                    # (1, C, tile_hw)      NCHW feature-map tile
    wproj_ref,                # (HIDDEN, C)          1x1-conv weight (torch-native layout)
    bproj_ref,                # (1, HIDDEN)
    wpe_ref, bpe_ref,         # panel_embed (single Linear)
    w1_ref, b1_ref,           # fused panel_decoder.l1 | panel_rt_decoder.l1  (HIDDEN, 2*HIDDEN)
    wa_ref,                   # (HIDDEN, OUT_W)   class_embed packed into col 0
    wb_ref,                   # (2*HIDDEN, OUT_W) block-diag [wpd2 -> cols 1:57 | wrt2 -> cols 57:64]
    bout_ref,                 # (1, OUT_W)        [bcls | bpd2 | brt2 | 0...]
    out_ref,                  # (1, 1, OUT_W)     fused [cls | panel | rot | trans | pad]
    pool_acc,                 # VMEM (HIDDEN, 128) f32 running-max accumulator
    *, hw, tile_hw,
):
    j = pl.program_id(1)

    @pl.when(j == 0)
    def _():
        pool_acc[...] = jnp.full(pool_acc.shape, -jnp.inf, pool_acc.dtype)

    # 1x1 conv in transposed (channels-major) layout: (HIDDEN,C)@(C,tile) -> (HIDDEN,tile).
    # The conv bias is constant across spatial positions so it is added after pooling.
    x = x_ref[0]                                               # (C, tile_hw)
    projT = jnp.dot(wproj_ref[...], x, preferred_element_type=jnp.float32)

    if hw % tile_hw != 0:
        # last tile overhangs the (zero-padded) spatial extent: mask with -inf
        col = jax.lax.broadcasted_iota(jnp.int32, projT.shape, 1) + j * tile_hw
        projT = jnp.where(col < hw, projT, -jnp.inf)

    # Running spatial max-pool: fold 128-lane chunks into the accumulator (pure VPU).
    m = pool_acc[...]
    for k in range(tile_hw // 128):
        m = jnp.maximum(m, projT[:, k * 128:(k + 1) * 128])
    pool_acc[...] = m

    @pl.when(j == pl.num_programs(1) - 1)
    def _():
        # One XLU transpose + sublane reduce per batch element; add conv bias now.
        hs = jnp.max(jnp.transpose(pool_acc[...]), axis=0, keepdims=True) + bproj_ref[...]  # (1, HIDDEN)

        # panel_embed (MLP with num_layers=1 == single Linear, no activation)
        pe = jnp.dot(hs, wpe_ref[...], preferred_element_type=jnp.float32) + bpe_ref[...]   # (1, HIDDEN)
        # fused first layers of panel_decoder / panel_rt_decoder + ReLU
        h1 = jnp.maximum(
            jnp.dot(pe, w1_ref[...], preferred_element_type=jnp.float32) + b1_ref[...], 0.0)  # (1, 2*HIDDEN)
        # fused lane-dense output projection: [cls | panel | rot | trans | pad]
        fused = (
            jnp.dot(hs, wa_ref[...], preferred_element_type=jnp.float32)
            + jnp.dot(h1, wb_ref[...], preferred_element_type=jnp.float32)
            + bout_ref[...]
        )                                                                                    # (1, OUT_W)
        out_ref[...] = fused[None]


def _pick_tile_hw(hw, c, itemsize, vmem_budget=24 << 20):
    """Largest 128-multiple tile whose double-buffered x slab + f32 projT fits the budget."""
    per_col = 2 * c * itemsize + 2 * HIDDEN * 4
    t = max(128, min(2048, (vmem_budget // per_col) // 128 * 128))
    hw_up = ((hw + 127) // 128) * 128
    return int(min(t, hw_up))


def garment_backbone_forward(src, params, *, tile_hw=None, stream_dtype=jnp.float32):
    """src: (bs, C, H, W) float32 (NCHW, as produced by the torch backbone)."""
    bs, C, H, W = src.shape
    HW = H * W
    itemsize = jnp.dtype(stream_dtype).itemsize

    if tile_hw is None:
        tile_hw = _pick_tile_hw(HW, C, itemsize)
    assert tile_hw % 128 == 0, "tile_hw must be a multiple of 128"
    n_hw = -(-HW // tile_hw)
    hw_pad = n_hw * tile_hw

    # NCHW -> (bs, C, HW): layout-preserving reshape, NO transpose / extra HBM pass.
    x = src.reshape(bs, C, HW).astype(stream_dtype)
    if hw_pad != HW:
        x = jnp.pad(x, ((0, 0), (0, 0), (0, hw_pad - HW)))   # padded cols masked in-kernel

    p = params
    # One-time tiny weight packing (negligible next to the feature-map stream).
    wproj_t = jnp.transpose(p["wproj"]).astype(stream_dtype)          # (HIDDEN, C)
    w1 = jnp.concatenate([p["wpd1"], p["wrt1"]], axis=1)              # (HIDDEN, 512)
    b1 = jnp.concatenate([p["bpd1"], p["brt1"]], axis=1)              # (1, 512)
    wa = jnp.zeros((HIDDEN, OUT_W), jnp.float32).at[:, 0:1].set(p["wcls"])
    wb = (jnp.zeros((2 * HIDDEN, OUT_W), jnp.float32)
          .at[:HIDDEN, 1:1 + PANEL_OUT].set(p["wpd2"])
          .at[HIDDEN:, 1 + PANEL_OUT:HEAD_W].set(p["wrt2"]))
    bout = (jnp.zeros((1, OUT_W), jnp.float32)
            .at[:, 0:1].set(p["bcls"])
            .at[:, 1:1 + PANEL_OUT].set(p["bpd2"])
            .at[:, 1 + PANEL_OUT:HEAD_W].set(p["brt2"]))

    weight_order = [wproj_t, p["bproj"], p["wpe"], p["bpe"], w1, b1, wa, wb, bout]

    full = lambda a: pl.BlockSpec(a.shape, lambda i, j: (0,) * a.ndim)
    in_specs = [pl.BlockSpec((1, C, tile_hw), lambda i, j: (i, 0, j))]
    in_specs += [full(w) for w in weight_order]

    out_specs = pl.BlockSpec((1, 1, OUT_W), lambda i, j: (i, 0, 0))
    out_shape = jax.ShapeDtypeStruct((bs, 1, OUT_W), jnp.float32)

    # VMEM sizing: double-buffered x tile + weights + projT intermediate + headroom.
    w_bytes = sum(int(w.size) * w.dtype.itemsize for w in weight_order)
    need = (2 * tile_hw * C * itemsize + 2 * w_bytes
            + 2 * tile_hw * HIDDEN * 4 + HIDDEN * 128 * 4 + (4 << 20))
    vmem_limit = int(min(max(need, 32 << 20), 60 << 20))

    kernel = functools.partial(garment_kernel, hw=HW, tile_hw=tile_hw)
    fused = pl.pallas_call(
        kernel,
        out_shape=out_shape,
        grid_spec=pltpu.PrefetchScalarGridSpec(
            num_scalar_prefetch=0,
            grid=(bs, n_hw),
            in_specs=in_specs,
            out_specs=out_specs,
            scratch_shapes=[pltpu.VMEM((HIDDEN, 128), jnp.float32)],
        ),
        compiler_params=pltpu.CompilerParams(
            dimension_semantics=("parallel", "arbitrary"),
            vmem_limit_bytes=vmem_limit,
        ),
    )(x, *weight_order)

    return {
        "output_class": fused[:, :, 0:1],
        "outlines": fused[:, :, 1:1 + PANEL_OUT],
        "rotations": fused[:, :, 1 + PANEL_OUT:1 + PANEL_OUT + 4],
        "translations": fused[:, :, 1 + PANEL_OUT + 4:HEAD_W],
    }


def make_params(key, num_channels):
    """Deterministic synthetic parameters with the shapes GarmentBackbone.__init__ implies."""
    ks = jax.random.split(key, 16)
    n = lambda k, shp: (0.02 * jax.random.normal(k, shp)).astype(jnp.float32)
    return {
        # input_proj: Conv2d(C, 256, kernel_size=1)
        "wproj": n(ks[0], (num_channels, HIDDEN)),
        "bproj": n(ks[1], (1, HIDDEN)),
        # class_embed: Linear(256, 1)
        "wcls": n(ks[2], (HIDDEN, 1)),
        "bcls": n(ks[3], (1, 1)),
        # panel_embed: MLP(256, 256, 256, num_layers=1) == Linear(256, 256)
        "wpe": n(ks[4], (HIDDEN, HIDDEN)),
        "bpe": n(ks[5], (1, HIDDEN)),
        # panel_decoder: MLP(256, 256, 56, num_layers=2)
        "wpd1": n(ks[6], (HIDDEN, HIDDEN)),
        "bpd1": n(ks[7], (1, HIDDEN)),
        "wpd2": n(ks[8], (HIDDEN, PANEL_OUT)),
        "bpd2": n(ks[9], (1, PANEL_OUT)),
        # panel_rt_decoder: MLP(256, 256, 7, num_layers=2)
        "wrt1": n(ks[10], (HIDDEN, HIDDEN)),
        "brt1": n(ks[11], (1, HIDDEN)),
        "wrt2": n(ks[12], (HIDDEN, RT_OUT)),
        "brt2": n(ks[13], (1, RT_OUT)),
    }


def reference(src, p):
    """Pure-JAX mirror of the torch forward, for validation."""
    bs, C, H, W = src.shape
    x = jnp.transpose(src, (0, 2, 3, 1)).reshape(bs, H * W, C)
    proj = x @ p["wproj"] + p["bproj"]                 # input_proj (1x1 conv)
    hs = jnp.max(proj, axis=1, keepdims=True)          # AdaptiveMaxPool1d(1) + transpose
    cls = hs @ p["wcls"] + p["bcls"]
    pe = hs @ p["wpe"] + p["bpe"]
    panel = jnp.maximum(pe @ p["wpd1"] + p["bpd1"], 0.0) @ p["wpd2"] + p["bpd2"]
    rt = jnp.maximum(pe @ p["wrt1"] + p["brt1"], 0.0) @ p["wrt2"] + p["brt2"]
    return {
        "output_class": cls,
        "outlines": panel,
        "rotations": rt[..., :4],
        "translations": rt[..., 4:],
    }


if __name__ == "__main__":
    key = jax.random.PRNGKey(0)
    k_x, k_p = jax.random.split(key)

    bs, C, H, W = 2, 4, 16, 16            # backbone.num_channels = 4 (small synthetic)
    src = jax.random.normal(k_x, (bs, C, H, W), dtype=jnp.float32)
    params = make_params(k_p, C)

    ref = reference(src, params)

    # auto tile (single spatial tile) and a forced 128 tile (exercises the
    # multi-step running-max path of the grid).
    for th in (None, 128):
        out = garment_backbone_forward(src, params, tile_hw=th)
        out = jax.tree_util.tree_map(jax.block_until_ready, out)
        for name in ("output_class", "outlines", "rotations", "translations"):
            assert out[name].shape == ref[name].shape, (name, out[name].shape, ref[name].shape)
            assert jnp.allclose(out[name], ref[name], atol=1e-5, rtol=1e-5), name

    print("KERNEL_OK")
</pallas_src>

<mosaic_0001>
module attributes {stable_mosaic.version = 11 : i64} {
  func.func @garment_kernel(%arg0: i32, %arg1: i32, %arg2: memref<1x4x256xf32, #tpu.memory_space<vmem>>, %arg3: memref<256x4xf32, #tpu.memory_space<vmem>>, %arg4: memref<1x256xf32, #tpu.memory_space<vmem>>, %arg5: memref<256x256xf32, #tpu.memory_space<vmem>>, %arg6: memref<1x256xf32, #tpu.memory_space<vmem>>, %arg7: memref<256x512xf32, #tpu.memory_space<vmem>>, %arg8: memref<1x512xf32, #tpu.memory_space<vmem>>, %arg9: memref<256x128xf32, #tpu.memory_space<vmem>>, %arg10: memref<512x128xf32, #tpu.memory_space<vmem>>, %arg11: memref<1x128xf32, #tpu.memory_space<vmem>>, %arg12: memref<1x1x128xf32, #tpu.memory_space<vmem>>, %arg13: memref<256x128xf32, #tpu.memory_space<vmem>>) attributes {dimension_semantics = [#tpu.dimension_semantics<parallel>, #tpu.dimension_semantics<arbitrary>], iteration_bounds = array<i64: 2, 1>, scalar_prefetch = 0 : i64, scratch_operands = 1 : i64, tpu.core_type = #tpu.core_type<tc>, window_params = [{transform_indices = @transform_0, window_bounds = array<i64: 1, 4, 256>}, {pipeline_mode = #tpu.pipeline_mode<synchronous>, transform_indices = @transform_1, window_bounds = array<i64: 256, 4>}, {pipeline_mode = #tpu.pipeline_mode<synchronous>, transform_indices = @transform_2, window_bounds = array<i64: 1, 256>}, {pipeline_mode = #tpu.pipeline_mode<synchronous>, transform_indices = @transform_3, window_bounds = array<i64: 256, 256>}, {pipeline_mode = #tpu.pipeline_mode<synchronous>, transform_indices = @transform_4, window_bounds = array<i64: 1, 256>}, {pipeline_mode = #tpu.pipeline_mode<synchronous>, transform_indices = @transform_5, window_bounds = array<i64: 256, 512>}, {pipeline_mode = #tpu.pipeline_mode<synchronous>, transform_indices = @transform_6, window_bounds = array<i64: 1, 512>}, {pipeline_mode = #tpu.pipeline_mode<synchronous>, transform_indices = @transform_7, window_bounds = array<i64: 256, 128>}, {pipeline_mode = #tpu.pipeline_mode<synchronous>, transform_indices = @transform_8, window_bounds = array<i64: 512, 128>}, {pipeline_mode = #tpu.pipeline_mode<synchronous>, transform_indices = @transform_9, window_bounds = array<i64: 1, 128>}, {transform_indices = @transform_10, window_bounds = array<i64: 1, 1, 128>}]} {
    %c0_i32 = arith.constant 0 : i32
    %0 = arith.cmpi eq, %arg1, %c0_i32 : i32
    %1 = arith.extui %0 : i1 to i32
    %c0_i32_0 = arith.constant 0 : i32
    %2 = arith.cmpi ne, %1, %c0_i32_0 : i32
    scf.if %2 {
      %cst_11 = arith.constant 0xFF800000 : f32
      %16 = vector.broadcast %cst_11 : f32 to vector<256x128xf32>
      %c0_12 = arith.constant 0 : index
      %c0_13 = arith.constant 0 : index
      %17 = vector.load %arg13[%c0_12, %c0_13] : memref<256x128xf32, #tpu.memory_space<vmem>>, vector<256x128xf32>
      tpu.vector_store %arg13[%c0_12, %c0_13], %16 {strides = array<i32>} : memref<256x128xf32, #tpu.memory_space<vmem>>, vector<256x128xf32>,
    } else {
    }
    %c0 = arith.constant 0 : index
    %c0_1 = arith.constant 0 : index
    %c0_2 = arith.constant 0 : index
    %3 = vector.load %arg2[%c0, %c0_1, %c0_2] : memref<1x4x256xf32, #tpu.memory_space<vmem>>, vector<1x4x256xf32>
    %4 = vector.shape_cast %3 : vector<1x4x256xf32> to vector<4x256xf32>
    %c0_3 = arith.constant 0 : index
    %c0_4 = arith.constant 0 : index
    %5 = vector.load %arg3[%c0_3, %c0_4] : memref<256x4xf32, #tpu.memory_space<vmem>>, vector<256x4xf32>
    %cst = arith.constant dense<0.000000e+00> : vector<256x256xf32>
    %6 = tpu.matmul %5, %4, %cst {dimension_numbers = #tpu.dot_dimension_numbers<[1], [0], [0], [1], [0, 0, 1, 1], [], []>} : vector<256x4xf32>, vector<4x256xf32>, vector<256x256xf32> -> vector<256x256xf32>
    %c0_5 = arith.constant 0 : index
    %c0_6 = arith.constant 0 : index
    %7 = vector.load %arg13[%c0_5, %c0_6] : memref<256x128xf32, #tpu.memory_space<vmem>>, vector<256x128xf32>
    %8 = vector.extract_strided_slice %6 {offsets = [0, 0], sizes = [256, 128], strides = [1, 1]} : vector<256x256xf32> to vector<256x128xf32>
    %9 = arith.maximumf %7, %8 : vector<256x128xf32>
    %10 = vector.extract_strided_slice %6 {offsets = [0, 128], sizes = [256, 128], strides = [1, 1]} : vector<256x256xf32> to vector<256x128xf32>
    %11 = arith.maximumf %9, %10 : vector<256x128xf32>
    %c0_7 = arith.constant 0 : index
    %c0_8 = arith.constant 0 : index
    %12 = vector.load %arg13[%c0_7, %c0_8] : memref<256x128xf32, #tpu.memory_space<vmem>>, vector<256x128xf32>
    tpu.vector_store %arg13[%c0_7, %c0_8], %11 {strides = array<i32>} : memref<256x128xf32, #tpu.memory_space<vmem>>, vector<256x128xf32>,
    %c0_i32_9 = arith.constant 0 : i32
    %13 = arith.cmpi eq, %arg1, %c0_i32_9 : i32
    %14 = arith.extui %13 : i1 to i32
    %c0_i32_10 = arith.constant 0 : i32
    %15 = arith.cmpi ne, %14, %c0_i32_10 : i32
    scf.if %15 {
      %c0_11 = arith.constant 0 : index
      %c0_12 = arith.constant 0 : index
      %16 = vector.load %arg13[%c0_11, %c0_12] : memref<256x128xf32, #tpu.memory_space<vmem>>, vector<256x128xf32>
      %17 = tpu.transpose %16, [1, 0] : vector<256x128xf32> -> vector<128x256xf32>
      %cst_13 = arith.constant dense<0xFF800000> : vector<256xf32>
      %18 = vector.multi_reduction <maximumf>, %17, %cst_13 [0] : vector<128x256xf32> to vector<256xf32>
      %19 = vector.shape_cast %18 : vector<256xf32> to vector<1x256xf32>
      %c0_14 = arith.constant 0 : index
      %c0_15 = arith.constant 0 : index
      %20 = vector.load %arg4[%c0_14, %c0_15] : memref<1x256xf32, #tpu.memory_space<vmem>>, vector<1x256xf32>
      %21 = arith.addf %19, %20 : vector<1x256xf32>
      %c0_16 = arith.constant 0 : index
      %c0_17 = arith.constant 0 : index
      %22 = vector.load %arg5[%c0_16, %c0_17] : memref<256x256xf32, #tpu.memory_space<vmem>>, vector<256x256xf32>
      %cst_18 = arith.constant dense<0.000000e+00> : vector<1x256xf32>
      %23 = tpu.matmul %21, %22, %cst_18 {dimension_numbers = #tpu.dot_dimension_numbers<[1], [0], [0], [1], [0, 0, 1, 1], [], []>} : vector<1x256xf32>, vector<256x256xf32>, vector<1x256xf32> -> vector<1x256xf32>
      %c0_19 = arith.constant 0 : index
      %c0_20 = arith.constant 0 : index
      %24 = vector.load %arg6[%c0_19, %c0_20] : memref<1x256xf32, #tpu.memory_space<vmem>>, vector<1x256xf32>
      %25 = arith.addf %23, %24 : vector<1x256xf32>
      %c0_21 = arith.constant 0 : index
      %c0_22 = arith.constant 0 : index
      %26 = vector.load %arg7[%c0_21, %c0_22] : memref<256x512xf32, #tpu.memory_space<vmem>>, vector<256x512xf32>
      %cst_23 = arith.constant dense<0.000000e+00> : vector<1x512xf32>
      %27 = tpu.matmul %25, %26, %cst_23 {dimension_numbers = #tpu.dot_dimension_numbers<[1], [0], [0], [1], [0, 0, 1, 1], [], []>} : vector<1x256xf32>, vector<256x512xf32>, vector<1x512xf32> -> vector<1x512xf32>
      %c0_24 = arith.constant 0 : index
      %c0_25 = arith.constant 0 : index
      %28 = vector.load %arg8[%c0_24, %c0_25] : memref<1x512xf32, #tpu.memory_space<vmem>>, vector<1x512xf32>
      %29 = arith.addf %27, %28 : vector<1x512xf32>
      %cst_26 = arith.constant 0.000000e+00 : f32
      %30 = vector.broadcast %cst_26 : f32 to vector<1x512xf32>
      %31 = arith.maximumf %29, %30 : vector<1x512xf32>
      %c0_27 = arith.constant 0 : index
      %c0_28 = arith.constant 0 : index
      %32 = vector.load %arg9[%c0_27, %c0_28] : memref<256x128xf32, #tpu.memory_space<vmem>>, vector<256x128xf32>
      %cst_29 = arith.constant dense<0.000000e+00> : vector<1x128xf32>
      %33 = tpu.matmul %21, %32, %cst_29 {dimension_numbers = #tpu.dot_dimension_numbers<[1], [0], [0], [1], [0, 0, 1, 1], [], []>} : vector<1x256xf32>, vector<256x128xf32>, vector<1x128xf32> -> vector<1x128xf32>
      %c0_30 = arith.constant 0 : index
      %c0_31 = arith.constant 0 : index
      %34 = vector.load %arg10[%c0_30, %c0_31] : memref<512x128xf32, #tpu.memory_space<vmem>>, vector<512x128xf32>
      %cst_32 = arith.constant dense<0.000000e+00> : vector<1x128xf32>
      %35 = tpu.matmul %31, %34, %cst_32 {dimension_numbers = #tpu.dot_dimension_numbers<[1], [0], [0], [1], [0, 0, 1, 1], [], []>} : vector<1x512xf32>, vector<512x128xf32>, vector<1x128xf32> -> vector<1x128xf32>
      %36 = arith.addf %33, %35 : vector<1x128xf32>
      %c0_33 = arith.constant 0 : index
      %c0_34 = arith.constant 0 : index
      %37 = vector.load %arg11[%c0_33, %c0_34] : memref<1x128xf32, #tpu.memory_space<vmem>>, vector<1x128xf32>
      %38 = arith.addf %36, %37 : vector<1x128xf32>
      %39 = vector.shape_cast %38 : vector<1x128xf32> to vector<1x1x128xf32>
      %c0_35 = arith.constant 0 : index
      %c0_36 = arith.constant 0 : index
      %c0_37 = arith.constant 0 : index
      %40 = vector.load %arg12[%c0_35, %c0_36, %c0_37] : memref<1x1x128xf32, #tpu.memory_space<vmem>>, vector<1x1x128xf32>
      tpu.vector_store %arg12[%c0_35, %c0_36, %c0_37], %39 {strides = array<i32>} : memref<1x1x128xf32, #tpu.memory_space<vmem>>, vector<1x1x128xf32>,
    } else {
    }
    return
  }
  func.func @transform_0(%arg0: i32, %arg1: i32) -> (i32, i32, i32) {
    %c0_i32 = arith.constant 0 : i32
    %c0_i32_0 = arith.constant 0 : i32
    return %arg0, %c0_i32, %arg1 : i32, i32, i32
  }
  func.func @transform_1(%arg0: i32, %arg1: i32) -> (i32, i32) {
    %c0_i32 = arith.constant 0 : i32
    %c0_i32_0 = arith.constant 0 : i32
    %c0_i32_1 = arith.constant 0 : i32
    return %c0_i32, %c0_i32_0 : i32, i32
  }
  func.func @transform_2(%arg0: i32, %arg1: i32) -> (i32, i32) {
    %c0_i32 = arith.constant 0 : i32
    %c0_i32_0 = arith.constant 0 : i32
    %c0_i32_1 = arith.constant 0 : i32
    return %c0_i32, %c0_i32_0 : i32, i32
  }
  func.func @transform_3(%arg0: i32, %arg1: i32) -> (i32, i32) {
    %c0_i32 = arith.constant 0 : i32
    %c0_i32_0 = arith.constant 0 : i32
    %c0_i32_1 = arith.constant 0 : i32
    return %c0_i32, %c0_i32_0 : i32, i32
  }
  func.func @transform_4(%arg0: i32, %arg1: i32) -> (i32, i32) {
    %c0_i32 = arith.constant 0 : i32
    %c0_i32_0 = arith.constant 0 : i32
    %c0_i32_1 = arith.constant 0 : i32
    return %c0_i32, %c0_i32_0 : i32, i32
  }
  func.func @transform_5(%arg0: i32, %arg1: i32) -> (i32, i32) {
    %c0_i32 = arith.constant 0 : i32
    %c0_i32_0 = arith.constant 0 : i32
    %c0_i32_1 = arith.constant 0 : i32
    return %c0_i32, %c0_i32_0 : i32, i32
  }
  func.func @transform_6(%arg0: i32, %arg1: i32) -> (i32, i32) {
    %c0_i32 = arith.constant 0 : i32
    %c0_i32_0 = arith.constant 0 : i32
    %c0_i32_1 = arith.constant 0 : i32
    return %c0_i32, %c0_i32_0 : i32, i32
  }
  func.func @transform_7(%arg0: i32, %arg1: i32) -> (i32, i32) {
    %c0_i32 = arith.constant 0 : i32
    %c0_i32_0 = arith.constant 0 : i32
    %c0_i32_1 = arith.constant 0 : i32
    return %c0_i32, %c0_i32_0 : i32, i32
  }
  func.func @transform_8(%arg0: i32, %arg1: i32) -> (i32, i32) {
    %c0_i32 = arith.constant 0 : i32
    %c0_i32_0 = arith.constant 0 : i32
    %c0_i32_1 = arith.constant 0 : i32
    return %c0_i32, %c0_i32_0 : i32, i32
  }
  func.func @transform_9(%arg0: i32, %arg1: i32) -> (i32, i32) {
    %c0_i32 = arith.constant 0 : i32
    %c0_i32_0 = arith.constant 0 : i32
    %c0_i32_1 = arith.constant 0 : i32
    return %c0_i32, %c0_i32_0 : i32, i32
  }
  func.func @transform_10(%arg0: i32, %arg1: i32) -> (i32, i32, i32) {
    %c0_i32 = arith.constant 0 : i32
    %c0_i32_0 = arith.constant 0 : i32
    %c0_i32_1 = arith.constant 0 : i32
    return %arg0, %c0_i32, %c0_i32_0 : i32, i32, i32
  }
}

</mosaic_0001>

<bundles_post_ra>
// kernel: tpu_custom_call.1
= control target key start
LH: loop header
LB: loop body
LE: loop exit
PB: predicated region body
PF: predicated region fallthrough
CT: control target
= control target key end

     0   :  { %15 = vsyncpa [#allocation4], 0  ;;  %s3090_s0 = inlined_call_operand.vmem [shape: f32[2,4,256], index: 0, kind: input, shape index: {}]   ;;  %s3091_s1 = inlined_call_operand.vmem [shape: f32[256,4], index: 1, kind: input, shape index: {}]   ;;  %s3092_s2 = inlined_call_operand.hbm [shape: f32[1,256], index: 2, kind: input, shape index: {}]   ;;  %s3093_s3 = inlined_call_operand.hbm [shape: f32[256,256], index: 3, kind: input, shape index: {}]   ;;  %s3094_s4 = inlined_call_operand.hbm [shape: f32[1,256], index: 4, kind: input, shape index: {}]   ;;  %s3095_s5 = inlined_call_operand.hbm [shape: f32[256,512], index: 5, kind: input, shape index: {}]   ;;  %s3096_s6 = inlined_call_operand.vmem [shape: f32[1,512], index: 6, kind: input, shape index: {}]   ;;  %s3097_s7 = inlined_call_operand.vmem [shape: f32[256,128], index: 7, kind: input, shape index: {}]   ;;  %s3098_s8 = inlined_call_operand.hbm [shape: f32[512,128], index: 8, kind: input, shape index: {}]   ;;  %s3099_s9 = inlined_call_operand.vmem [shape: f32[1,128], index: 9, kind: input, shape index: {}]   ;;  %s3100_s10 = inlined_call_operand.hbm [shape: f32[2,1,128], index: 10, kind: output, shape index: {}]  }
   0x1   :  { %16 = vsyncpa [#allocation7], 0 }
   0x2   :  { %17 = vsyncpa [#allocation10], 0 }
   0x3   :  { %18 = vsyncpa [#allocation5], 0 }
   0x4   :  { %20 = vsyncpa [#allocation5 + $0x1], 0  ;;  %s2613_s13 = smov 0   ;;  %s2615_s14 = smov 0  }
   0x5   :  { %s2617_s15 = smov 0   ;;  %s2619_s16 = smov 0  }
   0x6   :  { %s2621_s17 = smov 0   ;;  %s2623_s18 = smov 0  }
   0x7 LB: > { %3109 = sst [smem:[#allocation17_spill]] %s2531_s15  ;;  %s2051_s19 = sadd.s32 4294967295, %s2543_s18   ;;  %s2543_s18 = sphi %s2623_s18, %s26_s18   ;;  %s2539_s17 = sphi %s2621_s17, %s3128_s17   ;;  %s2535_s16 = sphi %s2619_s16, %s3127_s16   ;;  %s2531_s15 = sphi %s2617_s15, %s3126_s15   ;;  %s2527_s14 = sphi %s2615_s14, %s3130_s14   ;;  %s2523_s13 = sphi %s2613_s13, %s3129_s13  }
   0x8   : > { %3110 = sst [smem:[#allocation18_spill]] %s2539_s17  ;;  %s2052_s20 = sadd.s32 4294967294, %s2543_s18  }
   0x9   : > { %s38_s21 = sadd.s32 1, %s2539_s17  ;;  %s262_s22 = sadd.s32 1, %s2531_s15 }
   0xa   : > { %p40_p0 = scmp.ge.s32.totalorder %s38_s21, 2  ;;  %p272_p1 = scmp.ne.s32.totalorder %s2531_s15, %s2527_s14 }
   0xb   : > { %p273_p2 = scmp.eq.s32.totalorder %s2051_s19, 1  ;;  %p278_p3 = scmp.ne.s32.totalorder %s2527_s14, %s2523_s13 }
   0xc   : > { %s3132_s21 = smov (%p40_p0, %s38_s21), 0  ;;  %p279_p5 = scmp.eq.s32.totalorder %s2052_s20, 1 }
   0xd   : > { %3111 = sst [smem:[#allocation19_spill]] %s3132_s21  ;;  %p2653_p4 = por %p273_p2, %p272_p1 }
   0xe   : > { %s259_s24 = ssub.s32 %s2539_s17, %s3132_s21  ;;  %p2053_p6 = scmp.ge.s32.totalorder %s2543_s18, 1 }
   0xf   : > { %s3112_s23 = scalar_select %p2653_p4, 1, 0 }
  0x10   : > { %p260_p7 = scmp.eq.s32.totalorder %s259_s24, 0  ;;  %p2660_p8 = por %p279_p5, %p278_p3 }
  0x11   : > { %p286_p9 = scmp.lt.s32.totalorder %s2543_s18, 3  ;;  %p2672_p11 = scmp.eq.s32.totalorder %s2051_s19, 0 }
  0x12   : > { %s3113_s25 = scalar_select %p2660_p8, 1, 0 }
  0x13   : > { %s2666_s26 = scalar_select %p260_p7, %s2531_s15, %s262_s22  }
  0x14   : > { %3114 = sst [smem:[#allocation20_spill]] %s3113_s25  ;;  %p2668_p10 = pnand %p2053_p6, %p286_p9 }
  0x15   : > { %3115 = sst [smem:[#allocation21_spill]] %s2666_s26  ;;  %s2545_s29 = smov [#allocation6]  }
  0x16   : > { %s3116_s27 = scalar_select %p2668_p10, 1, 0 }
  0x17   : > { %s3117_s28 = scalar_select %p2672_p11, 1, 0 }
  0x18   : > { %p2233_p12 = pneg %p2668_p10  ;;  %s312_s30 = sshll.u32 %s2545_s29, 4  ;;  %s313_s30 = int_to_ptr.vmem [resolvable:$true] %s312_s30 }
  0x19   : > { %s2546_s12 = smov [#allocation9]   ;;  %s2336_s22 = scalar_lea.vmem %s313_s30, 8192 }
  0x1a   : > { %p2680_p13 = pnand %p2672_p11, %p2233_p12  ;;  %s336_s20 = sshll.u32 %s2546_s12, 4  ;;  %s337_s20 = int_to_ptr.vmem [resolvable:$true] %s336_s20 }
  0x1b   : > { %p2337_p1 = scmp.ne.s32.totalorder %s313_s30, %s2336_s22  ;;  %p2344_p5 = scmp.lt.s32.totalorder %s313_s30, %s313_s30 }
  0x1c   : > { %p2686_p0 = pneg %p2680_p13  ;;  %p2345_p6 = scmp.lt.s32.totalorder %s2336_s22, %s2336_s22 }
  0x1e   : > { %p2339_p2 = pnand %p2337_p1, %p2686_p0  ;;  %p2346_p7 = por %p2345_p6, %p2344_p5 }
  0x20   : > { %p2340_p3 = pneg %p2339_p2 }
  0x22   : > { %p2347_p9 = pnand %p2346_p7, %p2340_p3 }
  0x24   : > { %2350 = shalt.err (!%p2347_p9)
}
  0x25   : > { %s2547_s24 = smov 256   ;;  %s2548_s29 = smov 16  }
  0x26   : > { %2239 = dma.hbm_to_vmem [thread:$0]  (!%p2680_p13), %s3093_s3, 8192, %s313_s30, [#allocation7], %s2547_s24, %s2547_s24, %s2548_s29  }
  0x27   : > { %s2362_s17 = scalar_lea.vmem %s337_s20, 16384  ;;  %p2370_p2 = scmp.lt.s32.totalorder %s337_s20, %s337_s20 }
  0x28   : > { %p2363_p12 = scmp.ne.s32.totalorder %s337_s20, %s2362_s17  ;;  %p2371_p4 = scmp.lt.s32.totalorder %s2362_s17, %s2362_s17 }
  0x2a   : > { %p2365_p8 = pnand %p2363_p12, %p2686_p0  ;;  %p2372_p11 = por %p2371_p4, %p2370_p2 }
  0x2c   : > { %p2366_p1 = pneg %p2365_p8 }
  0x2e   : > { %p2373_p5 = pnand %p2372_p11, %p2366_p1 }
  0x30   : > { %2376 = shalt.err (!%p2373_p5)
}
  0x31   : > { %s2549_s22 = smov 512   ;;  %s2550_s26 = smov 32  }
  0x32   : > { %2245 = dma.hbm_to_vmem [thread:$0]  (!%p2680_p13), %s3095_s5, 16384, %s337_s20, [#allocation10], %s2549_s22, %s2549_s22, %s2550_s26  }
  0x33   : > { %s2551_s21 = smov [#allocation3]   ;;  %s2552_s24 = smov [#allocation8]  }
  0x34   : > { %s302_s30 = sshll.u32 %s2551_s21, 4  ;;  %s326_s29 = sshll.u32 %s2552_s24, 4  ;;  %s303_s30 = int_to_ptr.vmem [resolvable:$true] %s302_s30  ;;  %s327_s29 = int_to_ptr.vmem [resolvable:$true] %s326_s29 }
  0x35   : > { %s2388_s12 = scalar_lea.vmem %s303_s30, 32  ;;  %p2396_p3 = scmp.lt.s32.totalorder %s303_s30, %s303_s30 }
  0x36   : > { %p2389_p8 = scmp.ne.s32.totalorder %s303_s30, %s2388_s12  ;;  %p2397_p6 = scmp.lt.s32.totalorder %s2388_s12, %s2388_s12 }
  0x38   : > { %p2391_p4 = pnand %p2389_p8, %p2686_p0  ;;  %p2398_p7 = por %p2397_p6, %p2396_p3 }
  0x3a   : > { %p2392_p11 = pneg %p2391_p4 }
  0x3c   : > { %p2399_p9 = pnand %p2398_p7, %p2392_p11 }
  0x3e   : > { %2402 = shalt.err (!%p2399_p9)
}
  0x3f   : > { %2236 = dma.hbm_to_vmem [thread:$0]  (!%p2680_p13), %s3092_s2, 32, %s303_s30, [#allocation4]  }
  0x40   : > { %s2414_s25 = scalar_lea.vmem %s327_s29, 32  ;;  %p2422_p5 = scmp.lt.s32.totalorder %s327_s29, %s327_s29 }
  0x41   : > { %p2415_p12 = scmp.ne.s32.totalorder %s327_s29, %s2414_s25  ;;  %p2423_p8 = scmp.lt.s32.totalorder %s2414_s25, %s2414_s25 }
  0x43   : > { %p2417_p1 = pnand %p2415_p12, %p2686_p0  ;;  %p2424_p4 = por %p2423_p8, %p2422_p5 }
  0x45   : > { %p2418_p2 = pneg %p2417_p1 }
  0x47   : > { %p2425_p10 = pnand %p2424_p4, %p2418_p2 }
  0x49   : > { %2428 = shalt.err (!%p2425_p10)
}
  0x4a   : > { %2242 = dma.hbm_to_vmem [thread:$0]  (!%p2680_p13), %s3094_s4, 32, %s327_s29, [#allocation7]  }
  0x4b   : > { %s2553_s22 = smov [#allocation11]  }
  0x4c   : > { %s355_s21 = sshll.u32 %s2553_s22, 4  ;;  %s356_s21 = int_to_ptr.vmem [resolvable:$true] %s355_s21 }
  0x4d   : > { %s2440_s30 = scalar_lea.vmem %s356_s21, 8192  ;;  %p2448_p7 = scmp.lt.s32.totalorder %s356_s21, %s356_s21 }
  0x4e   : > { %p2441_p11 = scmp.ne.s32.totalorder %s356_s21, %s2440_s30  ;;  %p2449_p9 = scmp.lt.s32.totalorder %s2440_s30, %s2440_s30 }
  0x50   : > { %p2443_p3 = pnand %p2441_p11, %p2686_p0  ;;  %p2450_p12 = por %p2449_p9, %p2448_p7 }
  0x52   : > { %p2444_p6 = pneg %p2443_p3 }
  0x54   : > { %p2451_p1 = pnand %p2450_p12, %p2444_p6 }
  0x56   : > { %2454 = shalt.err (!%p2451_p1)
}
  0x57   : > { %s2554_s24 = smov 128   ;;  %s2555_s12 = smov 8  }
  0x58   : > { %2248 = dma.hbm_to_vmem [thread:$0]  (!%p2680_p13), %s3098_s8, 8192, %s356_s21, [#allocation10], %s2554_s24, %s2554_s24, %s2555_s12  }
  0x59   : > { %p3120_p10 = scmp.ne.s32.totalorder %s3116_s27, 0 }
  0x5a   : > { %p3121_p2 = scmp.ne.s32.totalorder (!%p3120_p10), %s3117_s28, 0 }
  0x5b   : > { %387 = sbr.rel (%p3120_p10) target bundleno = 1221 (0x4c5), region = 60 }
  0x60   : > { %2506 = dma.done.wait (%p3121_p2), [#allocation4], 32  }
  0x61   : > { %2508 = vsyncadd (%p3121_p2), [#allocation4], 4294967264 }
  0x62   : > { %2510 = dma.done.wait (%p3121_p2), [#allocation7], 8224  }
  0x63   : > { %2512 = vsyncadd (%p3121_p2), [#allocation7], 4294959072 }
  0x64   : > { %2514 = dma.done.wait (%p3121_p2), [#allocation10], 24576  }
  0x65   : > { %2516 = vsyncadd (%p3121_p2), [#allocation10], 4294942720  ;;  %p445_p13 = scmp.lt.s32.totalorder %s2535_s16, 1  ;;  %v2556_v0 = vmov 0.0   ;;  %vm622_vm0 = vcmask 1043456   ;;  %v491_v3 = vld [vmem:[%s3091_s1] sm:$0xff] }
  0x66   : > { %691 = vmatprep.mubr.f32.mxu0 %v2556_v0  ;;  %vm525_vm1 = vcmask 31744   ;;  %v492_v4 = vld [vmem:[%s3091_s1 + $0x8] sm:$0xff]  ;;  %v493_v5 = vld [vmem:[%s3091_s1 + $0x10] sm:$0xff]  ;;  %v494_v6 = vld [vmem:[%s3091_s1 + $0x18] sm:$0xff]  ;;  %s2102_s29 = sshll.u32 %s2535_s16, 4  ;;  %p3122_p5 = scmp.ne.s32.totalorder %s3112_s23, 0 }
  0x67   : > { %s446_s27 = scalar_select %p445_p13, %s2535_s16, 1  ;;  %v495_v7 = vld [vmem:[%s3091_s1 + $0x20] sm:$0xff]  ;;  %v496_v8 = vld [vmem:[%s3091_s1 + $0x28] sm:$0xff]  ;;  %v497_v9 = vld [vmem:[%s3091_s1 + $0x30] sm:$0xff] }
  0x68   : > { %v498_v10 = vld [vmem:[%s3091_s1 + $0x38] sm:$0xff]  ;;  %v499_v11 = vld [vmem:[%s3091_s1 + $0x40] sm:$0xff]  ;;  %v500_v12 = vld [vmem:[%s3091_s1 + $0x48] sm:$0xff]  ;;  %s1930_s22 = scalar_lea.hbm %s3100_s10, %s2102_s29  ;;  %s2557_s24 = smov [#allocation12]  }
  0x69   : > { %s2105_s11 = sshll.u32 %s446_s27, 3  ;;  %v501_v13 = vld [vmem:[%s3091_s1 + $0x50] sm:$0xff]  ;;  %v502_v14 = vld [vmem:[%s3091_s1 + $0x58] sm:$0xff]  ;;  %v503_v15 = vld [vmem:[%s3091_s1 + $0x60] sm:$0xff]  ;;  %s442_s27 = sand.u32 1, %s2527_s14  }
  0x6a   : > { %s452_s25 = scalar_lea.vmem %s3090_s0, %s2105_s11  ;;  %v504_v16 = vld [vmem:[%s3091_s1 + $0x68] sm:$0xff]  ;;  %v505_v17 = vld [vmem:[%s3091_s1 + $0x70] sm:$0xff]  ;;  %v506_v18 = vld [vmem:[%s3091_s1 + $0x78] sm:$0xff]  ;;  %s1920_s21 = scalar_lea.sflag [#allocation5], %s442_s27 }
  0x6b   : > { %v490_v1 = vld [vmem:[%s452_s25] sm:$0xff]  ;;  %v508_v20 = vld [vmem:[%s3091_s1 + $0x88] sm:$0xff]  ;;  %v509_v21 = vld [vmem:[%s3091_s1 + $0x90] sm:$0xff]  ;;  %s443_s25 = scalar_lea.vmem [#allocation12], %s442_s27  ;;  %s2459_s12 = sshll.u32 %s2557_s24, 4  ;;  %s2460_s12 = int_to_ptr.vmem [resolvable:$false] %s2459_s12 }
  0x6c   : > { %v524_v2 = vcombine.high %v490_v1, %v490_v1  ;;  %v507_v19 = vld [vmem:[%s3091_s1 + $0x80] sm:$0xff]  ;;  %v510_v22 = vld [vmem:[%s3091_s1 + $0x98] sm:$0xff]  ;;  %v512_v24 = vld [vmem:[%s3091_s1 + $0xa8] sm:$0xff]  ;;  %s1932_s26 = sshll.u32 %s443_s25, 4  ;;  %s2461_s16 = scalar_lea.vmem %s2460_s12, 32  ;;  %s1933_s26 = int_to_ptr.vmem [resolvable:$true] %s1932_s26 }
  0x6d   : > { %v511_v23 = vld [vmem:[%s3091_s1 + $0xa0] sm:$0xff]  ;;  %v513_v25 = vld [vmem:[%s3091_s1 + $0xb0] sm:$0xff]  ;;  %v514_v26 = vld [vmem:[%s3091_s1 + $0xb8] sm:$0xff]  ;;  %s2455_s30 = scalar_lea.vmem %s1933_s26, 16  ;;  %p2462_p11 = scmp.lt.s32.totalorder %s1933_s26, %s2460_s12 }
  0x6e   : > { %2068 = vmatprep.subr.msk.mxu0 %vm622_vm0, %v524_v2  ;;  %v515_v27 = vld [vmem:[%s3091_s1 + $0xc0] sm:$0xff]  ;;  %v516_v28 = vld [vmem:[%s3091_s1 + $0xc8] sm:$0xff]  ;;  %v517_v29 = vld [vmem:[%s3091_s1 + $0xd0] sm:$0xff]  ;;  %p2456_p0 = scmp.ne.s32.totalorder %s1933_s26, %s2455_s30  ;;  %p2463_p3 = scmp.lt.s32.totalorder %s2461_s16, %s2455_s30 }
  0x6f   : > { %2069 = vmatpush1.msk.msra.mxu0 %vm622_vm0, %v490_v1  ;;  %v518_v30 = vld [vmem:[%s3091_s1 + $0xd8] sm:$0xff]  ;;  %v519_v31 = vld [vmem:[%s3091_s1 + $0xe0] sm:$0xff]  ;;  %v520_v32 = vld [vmem:[%s3091_s1 + $0xe8] sm:$0xff] }
  0x70   : > { %2070 = vmatmul.mubr.msk.f32.vlgmr.msra.gmra.mxu0 %vm525_vm1, %v491_v3  ;;  %v521_v33 = vld [vmem:[%s3091_s1 + $0xf0] sm:$0xff]  ;;  %v522_v34 = vld [vmem:[%s3091_s1 + $0xf8] sm:$0xff]  ;;  %p2457_p8 = pnand %p2456_p0, %p3122_p5  ;;  %p2464_p6 = por %p2463_p3, %p2462_p11 }
  0x71   : > { %697 = vmatprep.mubr.f32.mxu0 %v2556_v0 }
  0x72   : > { %p2458_p4 = pneg %p2457_p8 }
  0x74   : > { %2071 = vmatmul.mubr.msk.f32.gmra.mxu0 %vm525_vm1, %v492_v4  ;;  %p2465_p7 = pnand %p2464_p6, %p2458_p4 }
  0x75   : > { %703 = vmatprep.mubr.f32.mxu0 %v2556_v0 }
  0x78   : > { %2072 = vmatmul.mubr.msk.f32.gmra.mxu0 %vm525_vm1, %v493_v5 }
  0x79   : > { %709 = vmatprep.mubr.f32.mxu0 %v2556_v0 }
  0x7c   : > { %2073 = vmatmul.mubr.msk.f32.gmra.mxu0 %vm525_vm1, %v494_v6 }
  0x7d   : > { %715 = vmatprep.mubr.f32.mxu0 %v2556_v0 }
  0x80   : > { %2074 = vmatmul.mubr.msk.f32.gmra.mxu0 %vm525_vm1, %v495_v7 }
  0x81   : > { %721 = vmatprep.mubr.f32.mxu0 %v2556_v0 }
  0x84   : > { %2075 = vmatmul.mubr.msk.f32.gmra.mxu0 %vm525_vm1, %v496_v8 }
  0x85   : > { %727 = vmatprep.mubr.f32.mxu0 %v2556_v0 }
  0x88   : > { %2076 = vmatmul.mubr.msk.f32.gmra.mxu0 %vm525_vm1, %v497_v9 }
  0x89   : > { %733 = vmatprep.mubr.f32.mxu0 %v2556_v0 }
  0x8c   : > { %2077 = vmatmul.mubr.msk.f32.gmra.mxu0 %vm525_vm1, %v498_v10 }
  0x8d   : > { %739 = vmatprep.mubr.f32.mxu0 %v2556_v0 }
  0x90   : > { %2078 = vmatmul.mubr.msk.f32.gmra.mxu0 %vm525_vm1, %v499_v11 }
  0x91   : > { %745 = vmatprep.mubr.f32.mxu0 %v2556_v0 }
  0x94   : > { %2079 = vmatmul.mubr.msk.f32.gmra.mxu0 %vm525_vm1, %v500_v12 }
  0x95   : > { %751 = vmatprep.mubr.f32.mxu0 %v2556_v0 }
  0x98   : > { %2080 = vmatmul.mubr.msk.f32.gmra.mxu0 %vm525_vm1, %v501_v13 }
  0x99   : > { %757 = vmatprep.mubr.f32.mxu0 %v2556_v0 }
  0x9c   : > { %2081 = vmatmul.mubr.msk.f32.gmra.mxu0 %vm525_vm1, %v502_v14 }
  0x9d   : > { %763 = vmatprep.mubr.f32.mxu0 %v2556_v0 }
  0xa0   : > { %2082 = vmatmul.mubr.msk.f32.gmra.mxu0 %vm525_vm1, %v503_v15 }
  0xa1   : > { %769 = vmatprep.mubr.f32.mxu0 %v2556_v0 }
  0xa4   : > { %2083 = vmatmul.mubr.msk.f32.gmra.mxu0 %vm525_vm1, %v504_v16 }
  0xa5   : > { %775 = vmatprep.mubr.f32.mxu0 %v2556_v0 }
  0xa8   : > { %2084 = vmatmul.mubr.msk.f32.gmra.mxu0 %vm525_vm1, %v505_v17 }
  0xa9   : > { %781 = vmatprep.mubr.f32.mxu0 %v2556_v0 }
  0xac   : > { %2085 = vmatmul.mubr.msk.f32.gmra.mxu0 %vm525_vm1, %v506_v18 }
  0xad   : > { %787 = vmatprep.mubr.f32.mxu0 %v2556_v0 }
  0xb0   : > { %2086 = vmatmul.mubr.msk.f32.gmra.mxu0 %vm525_vm1, %v507_v19 }
  0xb1   : > { %793 = vmatprep.mubr.f32.mxu0 %v2556_v0 }
  0xb4   : > { %2087 = vmatmul.mubr.msk.f32.gmra.mxu0 %vm525_vm1, %v508_v20 }
  0xb5   : > { %799 = vmatprep.mubr.f32.mxu0 %v2556_v0 }
  0xb8   : > { %2088 = vmatmul.mubr.msk.f32.gmra.mxu0 %vm525_vm1, %v509_v21 }
  0xb9   : > { %805 = vmatprep.mubr.f32.mxu0 %v2556_v0 }
  0xbc   : > { %2089 = vmatmul.mubr.msk.f32.gmra.mxu0 %vm525_vm1, %v510_v22 }
  0xbd   : > { %811 = vmatprep.mubr.f32.mxu0 %v2556_v0 }
  0xc0   : > { %2090 = vmatmul.mubr.msk.f32.gmra.mxu0 %vm525_vm1, %v511_v23 }
  0xc1   : > { %817 = vmatprep.mubr.f32.mxu0 %v2556_v0 }
  0xc4   : > { %2091 = vmatmul.mubr.msk.f32.gmra.mxu0 %vm525_vm1, %v512_v24 }
  0xc5   : > { %823 = vmatprep.mubr.f32.mxu0 %v2556_v0 }
  0xc8   : > { %2092 = vmatmul.mubr.msk.f32.gmra.mxu0 %vm525_vm1, %v513_v25 }
  0xc9   : > { %829 = vmatprep.mubr.f32.mxu0 %v2556_v0 }
  0xcc   : > { %2093 = vmatmul.mubr.msk.f32.gmra.mxu0 %vm525_vm1, %v514_v26 }
  0xcd   : > { %835 = vmatprep.mubr.f32.mxu0 %v2556_v0 }
  0xd0   : > { %2094 = vmatmul.mubr.msk.f32.gmra.mxu0 %vm525_vm1, %v515_v27 }
  0xd1   : > { %841 = vmatprep.mubr.f32.mxu0 %v2556_v0 }
  0xd4   : > { %2095 = vmatmul.mubr.msk.f32.gmra.mxu0 %vm525_vm1, %v516_v28 }
  0xd5   : > { %847 = vmatprep.mubr.f32.mxu0 %v2556_v0 }
  0xd8   : > { %2096 = vmatmul.mubr.msk.f32.gmra.mxu0 %vm525_vm1, %v517_v29 }
  0xd9   : > { %853 = vmatprep.mubr.f32.mxu0 %v2556_v0 }
  0xdc   : > { %2097 = vmatmul.mubr.msk.f32.gmra.mxu0 %vm525_vm1, %v518_v30  ;;  %v1198_v30 = vld [vmem:[#allocation6 + $0xf8] sm:$0xff] }
  0xdd   : > { %859 = vmatprep.mubr.f32.mxu0 %v2556_v0  ;;  %1243 = vmatprep.subr.mxu1 %v1198_v30 }
  0xe0   : > { %2098 = vmatmul.mubr.msk.f32.gmra.mxu0 %vm525_vm1, %v519_v31 }
  0xe1   : > { %865 = vmatprep.mubr.f32.mxu0 %v2556_v0 }
  0xe4   : > { %2099 = vmatmul.mubr.msk.f32.gmra.mxu0 %vm525_vm1, %v520_v32 }
  0xe5   : > { %871 = vmatprep.mubr.f32.mxu0 %v2556_v0 }
  0xe8   : > { %2100 = vmatmul.mubr.msk.f32.gmra.mxu0 %vm525_vm1, %v521_v33  ;;  %v1197_v33 = vld [vmem:[#allocation6 + $0xf0] sm:$0xff] }
  0xe9   : > { %877 = vmatprep.mubr.f32.mxu0 %v2556_v0  ;;  %1244 = vmatpush1.msra.mxu1 %v1197_v33 }
  0xec   : > { %2101 = vmatmul.mubr.msk.f32.gmra.mxu0 %vm525_vm1, %v522_v34 }
 0x130   : > { %v693_v35 = vpop.f32.mrf.mxu0 }
 0x132   : > { %v695_v36 = vpop.f32.mrf.mxu0 }
 0x133   : > { %v948_v37 = vmax.f32 %v693_v35, %v695_v36  ;;  %v1196_v35 = vld [vmem:[#allocation6 + $0xe8] sm:$0xff]  ;;  %v1195_v36 = vld [vmem:[#allocation6 + $0xe0] sm:$0xff] }
 0x134   : > { %v699_v38 = vpop.f32.mrf.mxu0  ;;  %1245 = vmatprep.subr.mxu1 %v1196_v35  ;;  %v1223_v35 = vld [vmem:[#allocation6 + $0x1c0] sm:$0xff] }
 0x135   : > { %1047 = vxpose.xlu1.b32.start [1/16] %v948_v37, 128  ;;  %v1194_v37 = vld [vmem:[#allocation6 + $0xd8] sm:$0xff]  ;;  %1246 = vmatpush1.msra.mxu1 %v1195_v36 }
 0x136   : > { %v701_v39 = vpop.f32.mrf.mxu0  ;;  %1247 = vmatprep.subr.mxu1 %v1194_v37  ;;  %v1222_v36 = vld [vmem:[#allocation6 + $0x1b8] sm:$0xff] }
 0x137   : > { %v949_v40 = vmax.f32 %v699_v38, %v701_v39 }
 0x138   : > { %v705_v41 = vpop.f32.mrf.mxu0 }
 0x139   : > { %1048 = vxpose.xlu1.b32.cont [2/16] %v949_v40, 128  ;;  %v1193_v40 = vld [vmem:[#allocation6 + $0xd0] sm:$0xff] }
 0x13a   : > { %v707_v42 = vpop.f32.mrf.mxu0  ;;  %1248 = vmatpush1.msra.mxu1 %v1193_v40 }
 0x13b   : > { %v950_v43 = vmax.f32 %v705_v41, %v707_v42  ;;  %v1192_v42 = vld [vmem:[#allocation6 + $0xc8] sm:$0xff] }
 0x13c   : > { %v711_v44 = vpop.f32.mrf.mxu0  ;;  %1249 = vmatprep.subr.mxu1 %v1192_v42  ;;  %v1219_v42 = vld [vmem:[#allocation6 + $0x1a0] sm:$0xff] }
 0x13d   : > { %1049 = vxpose.xlu1.b32.cont [3/16] %v950_v43, 128  ;;  %v1191_v43 = vld [vmem:[#allocation6 + $0xc0] sm:$0xff] }
 0x13e   : > { %v713_v45 = vpop.f32.mrf.mxu0  ;;  %1250 = vmatpush1.msra.mxu1 %v1191_v43  ;;  %v1218_v43 = vld [vmem:[#allocation6 + $0x198] sm:$0xff] }
 0x13f   : > { %v951_v46 = vmax.f32 %v711_v44, %v713_v45  ;;  %v1190_v44 = vld [vmem:[#allocation6 + $0xb8] sm:$0xff] }
 0x140   : > { %v717_v47 = vpop.f32.mrf.mxu0  ;;  %1251 = vmatprep.subr.mxu1 %v1190_v44 }
 0x141   : > { %1050 = vxpose.xlu1.b32.cont [4/16] %v951_v46, 128 }
 0x142   : > { %v719_v48 = vpop.f32.mrf.mxu0 }
 0x143   : > { %v952_v49 = vmax.f32 %v717_v47, %v719_v48  ;;  %v1189_v47 = vld [vmem:[#allocation6 + $0xb0] sm:$0xff] }
 0x144   : > { %v723_v50 = vpop.f32.mrf.mxu0  ;;  %1252 = vmatpush1.msra.mxu1 %v1189_v47 }
 0x145   : > { %1051 = vxpose.xlu1.b32.cont [5/16] %v952_v49, 128  ;;  %v1188_v49 = vld [vmem:[#allocation6 + $0xa8] sm:$0xff] }
 0x146   : > { %v725_v51 = vpop.f32.mrf.mxu0  ;;  %1253 = vmatprep.subr.mxu1 %v1188_v49 }
 0x147   : > { %v953_v52 = vmax.f32 %v723_v50, %v725_v51  ;;  %v1187_v50 = vld [vmem:[#allocation6 + $0xa0] sm:$0xff]  ;;  %v1186_v51 = vld [vmem:[#allocation6 + $0x98] sm:$0xff] }
 0x148   : > { %v729_v53 = vpop.f32.mrf.mxu0  ;;  %1254 = vmatpush1.msra.mxu1 %v1187_v50  ;;  %v1215_v50 = vld [vmem:[#allocation6 + $0x180] sm:$0xff] }
 0x149   : > { %1052 = vxpose.xlu1.b32.cont [6/16] %v953_v52, 128  ;;  %1255 = vmatprep.subr.mxu1 %v1186_v51  ;;  %v1214_v51 = vld [vmem:[#allocation6 + $0x178] sm:$0xff] }
 0x14a   : > { %v731_v54 = vpop.f32.mrf.mxu0 }
 0x14b   : > { %v954_v55 = vmax.f32 %v729_v53, %v731_v54  ;;  %v1185_v54 = vld [vmem:[#allocation6 + $0x90] sm:$0xff] }
 0x14c   : > { %v735_v56 = vpop.f32.mrf.mxu0  ;;  %1256 = vmatpush1.msra.mxu1 %v1185_v54  ;;  %v1211_v54 = vld [vmem:[#allocation6 + $0x160] sm:$0xff] }
 0x14d   : > { %1053 = vxpose.xlu1.b32.cont [7/16] %v954_v55, 128 }
 0x14e   : > { %v737_v57 = vpop.f32.mrf.mxu0 }
 0x14f   : > { %v955_v58 = vmax.f32 %v735_v56, %v737_v57  ;;  %v1184_v56 = vld [vmem:[#allocation6 + $0x88] sm:$0xff]  ;;  %v1183_v57 = vld [vmem:[#allocation6 + $0x80] sm:$0xff] }
 0x150   : > { %v741_v59 = vpop.f32.mrf.mxu0  ;;  %1257 = vmatprep.subr.mxu1 %v1184_v56  ;;  %v1209_v56 = vld [vmem:[#allocation6 + $0x150] sm:$0xff] }
 0x151   : > { %1054 = vxpose.xlu1.b32.cont [8/16] %v955_v58, 128  ;;  %v1182_v58 = vld [vmem:[#allocation6 + $0x78] sm:$0xff]  ;;  %1258 = vmatpush1.msra.mxu1 %v1183_v57  ;;  %v1208_v57 = vld [vmem:[#allocation6 + $0x148] sm:$0xff] }
 0x152   : > { %v743_v60 = vpop.f32.mrf.mxu0  ;;  %1259 = vmatprep.subr.mxu1 %v1182_v58  ;;  %v1207_v58 = vld [vmem:[#allocation6 + $0x140] sm:$0xff] }
 0x153   : > { %v956_v61 = vmax.f32 %v741_v59, %v743_v60 }
 0x154   : > { %v747_v62 = vpop.f32.mrf.mxu0 }
 0x155   : > { %1055 = vxpose.xlu1.b32.cont [9/16] %v956_v61, 128  ;;  %v1181_v61 = vld [vmem:[#allocation6 + $0x70] sm:$0xff] }
 0x156   : > { %v749_v63 = vpop.f32.mrf.mxu0  ;;  %1260 = vmatpush1.msra.mxu1 %v1181_v61  ;;  %v1204_v61 = vld [vmem:[#allocation6 + $0x128] sm:$0xff] }
 0x157   : > { %v957_v0 = vmax.f32 %v747_v62, %v749_v63  ;;  %v1180_v63 = vld [vmem:[#allocation6 + $0x68] sm:$0xff] }
 0x158   : > { %v753_v1 = vpop.f32.mrf.mxu0  ;;  %1261 = vmatprep.subr.mxu1 %v1180_v63  ;;  %v1202_v63 = vld [vmem:[#allocation6 + $0x118] sm:$0xff] }
 0x159   : > { %1056 = vxpose.xlu1.b32.cont [10/16] %v957_v0, 128  ;;  %v1179_v0 = vld [vmem:[#allocation6 + $0x60] sm:$0xff] }
 0x15a   : > { %v755_v2 = vpop.f32.mrf.mxu0  ;;  %1262 = vmatpush1.msra.mxu1 %v1179_v0  ;;  %v1201_v0 = vld [vmem:[#allocation6 + $0x110] sm:$0xff] }
 0x15b   : > { %v958_v3 = vmax.f32 %v753_v1, %v755_v2  ;;  %v1178_v1 = vld [vmem:[#allocation6 + $0x58] sm:$0xff] }
 0x15c   : > { %v759_v4 = vpop.f32.mrf.mxu0  ;;  %1263 = vmatprep.subr.mxu1 %v1178_v1  ;;  %v1200_v1 = vld [vmem:[#allocation6 + $0x108] sm:$0xff] }
 0x15d   : > { %1057 = vxpose.xlu1.b32.cont [11/16] %v958_v3, 128 }
 0x15e   : > { %v761_v5 = vpop.f32.mrf.mxu0 }
 0x15f   : > { %v959_v6 = vmax.f32 %v759_v4, %v761_v5  ;;  %v1177_v4 = vld [vmem:[#allocation6 + $0x50] sm:$0xff] }
 0x160   : > { %v765_v7 = vpop.f32.mrf.mxu0  ;;  %1264 = vmatpush1.msra.mxu1 %v1177_v4  ;;  %v1376_v4 = vld [vmem:[#allocation9 + $0x1f0] sm:$0xff] }
 0x161   : > { %1058 = vxpose.xlu1.b32.cont [12/16] %v959_v6, 128  ;;  %v1176_v6 = vld [vmem:[#allocation6 + $0x48] sm:$0xff] }
 0x162   : > { %v767_v8 = vpop.f32.mrf.mxu0  ;;  %1265 = vmatprep.subr.mxu1 %v1176_v6 }
 0x163   : > { %v960_v9 = vmax.f32 %v765_v7, %v767_v8  ;;  %v1175_v7 = vld [vmem:[#allocation6 + $0x40] sm:$0xff]  ;;  %v1174_v8 = vld [vmem:[#allocation6 + $0x38] sm:$0xff] }
 0x164   : > { %v771_v10 = vpop.f32.mrf.mxu0  ;;  %1266 = vmatpush1.msra.mxu1 %v1175_v7  ;;  %v1372_v7 = vld [vmem:[#allocation9 + $0x1d0] sm:$0xff] }
 0x165   : > { %1059 = vxpose.xlu1.b32.cont [13/16] %v960_v9, 128  ;;  %1267 = vmatprep.subr.mxu1 %v1174_v8  ;;  %v1369_v8 = vld [vmem:[#allocation9 + $0x1b8] sm:$0xff] }
 0x166   : > { %v773_v11 = vpop.f32.mrf.mxu0 }
 0x167   : > { %v961_v12 = vmax.f32 %v771_v10, %v773_v11  ;;  %v1173_v11 = vld [vmem:[#allocation6 + $0x30] sm:$0xff] }
 0x168   : > { %v777_v13 = vpop.f32.mrf.mxu0  ;;  %1268 = vmatpush1.msra.mxu1 %v1173_v11  ;;  %v1364_v11 = vld [vmem:[#allocation9 + $0x190] sm:$0xff] }
 0x169   : > { %1060 = vxpose.xlu1.b32.cont [14/16] %v961_v12, 128 }
 0x16a   : > { %v779_v14 = vpop.f32.mrf.mxu0 }
 0x16b   : > { %v962_v15 = vmax.f32 %v777_v13, %v779_v14  ;;  %v1172_v13 = vld [vmem:[#allocation6 + $0x28] sm:$0xff]  ;;  %v1171_v14 = vld [vmem:[#allocation6 + $0x20] sm:$0xff] }
 0x16c   : > { %v783_v16 = vpop.f32.mrf.mxu0  ;;  %1269 = vmatprep.subr.mxu1 %v1172_v13  ;;  %v1375_v13 = vld [vmem:[#allocation9 + $0x1e8] sm:$0xff] }
 0x16d   : > { %1061 = vxpose.xlu1.b32.cont [15/16] %v962_v15, 128  ;;  %v1170_v15 = vld [vmem:[#allocation6 + $0x18] sm:$0xff]  ;;  %1270 = vmatpush1.msra.mxu1 %v1171_v14 }
 0x16e   : > { %v785_v17 = vpop.f32.mrf.mxu0  ;;  %1271 = vmatprep.subr.mxu1 %v1170_v15  ;;  %v1360_v15 = vld [vmem:[#allocation9 + $0x170] sm:$0xff] }
 0x16f   : > { %v963_v18 = vmax.f32 %v783_v16, %v785_v17 }
 0x170   : > { %v789_v19 = vpop.f32.mrf.mxu0 }
 0x171   : > { %1062 = vxpose.xlu1.b32.end [16/16] %v963_v18, 128  ;;  %v1169_v18 = vld [vmem:[#allocation6 + $0x10] sm:$0xff] }
 0x172   : > { %v791_v20 = vpop.f32.mrf.mxu0  ;;  %1272 = vmatpush1.msra.mxu1 %v1169_v18  ;;  %v1353_v18 = vld [vmem:[#allocation9 + $0x138] sm:$0xff] }
 0x173   : > { %v964_v21 = vmax.f32 %v789_v19, %v791_v20  ;;  %v1168_v20 = vld [vmem:[#allocation6 + $0x8] sm:$0xff] }
 0x174   : > { %v795_v22 = vpop.f32.mrf.mxu0  ;;  %1273 = vmatprep.subr.mxu1 %v1168_v20  ;;  %v1349_v20 = vld [vmem:[#allocation9 + $0x118] sm:$0xff] }
 0x175   : > { %1079 = vxpose.xlu0.b32.start [1/16] %v964_v21, 128  ;;  %v1167_v21 = vld [vmem:[#allocation6] sm:$0xff] }
 0x176   : > { %v797_v23 = vpop.f32.mrf.mxu0  ;;  %1274 = vmatpush1.msra.mxu1 %v1167_v21 }
 0x177   : > { %v965_v24 = vmax.f32 %v795_v22, %v797_v23  ;;  %v1230_v22 = vld [vmem:[#allocation6 + $0x1f8] sm:$0xff] }
 0x178   : > { %v801_v25 = vpop.f32.mrf.mxu0  ;;  %1275 = vmatprep.subr.mxu1 %v1230_v22  ;;  %v1348_v22 = vld [vmem:[#allocation9 + $0x110] sm:$0xff] }
 0x179   : > { %1080 = vxpose.xlu0.b32.cont [2/16] %v965_v24, 128 }
 0x17a   : > { %v803_v26 = vpop.f32.mrf.mxu0 }
 0x17b   : > { %v966_v27 = vmax.f32 %v801_v25, %v803_v26  ;;  %v1229_v25 = vld [vmem:[#allocation6 + $0x1f0] sm:$0xff] }
 0x17c   : > { %v807_v28 = vpop.f32.mrf.mxu0  ;;  %1276 = vmatpush2.msra.mxu1 %v1229_v25  ;;  %v1341_v25 = vld [vmem:[#allocation9 + $0xd8] sm:$0xff] }
 0x17d   : > { %1081 = vxpose.xlu0.b32.cont [3/16] %v966_v27, 128  ;;  %v1228_v27 = vld [vmem:[#allocation6 + $0x1e8] sm:$0xff] }
 0x17e   : > { %v809_v29 = vpop.f32.mrf.mxu0  ;;  %1277 = vmatprep.subr.mxu1 %v1228_v27  ;;  %v1337_v27 = vld [vmem:[#allocation9 + $0xb8] sm:$0xff] }
 0x17f   : > { %v967_v31 = vmax.f32 %v807_v28, %v809_v29  ;;  %v1227_v28 = vld [vmem:[#allocation6 + $0x1e0] sm:$0xff]  ;;  %v1226_v29 = vld [vmem:[#allocation6 + $0x1d8] sm:$0xff] }
 0x180   : > { %v813_v32 = vpop.f32.mrf.mxu0  ;;  %1278 = vmatpush2.msra.mxu1 %v1227_v28 }
 0x181   : > { %1082 = vxpose.xlu0.b32.cont [4/16] %v967_v31, 128  ;;  %1279 = vmatprep.subr.mxu1 %v1226_v29  ;;  %v1336_v29 = vld [vmem:[#allocation9 + $0xb0] sm:$0xff] }
 0x182   : > { %v815_v34 = vpop.f32.mrf.mxu0 }
 0x183   : > { %v968_v38 = vmax.f32 %v813_v32, %v815_v34  ;;  %v1225_v32 = vld [vmem:[#allocation6 + $0x1d0] sm:$0xff]  ;;  %v1224_v34 = vld [vmem:[#allocation6 + $0x1c8] sm:$0xff] }
 0x184   : > { %v819_v39 = vpop.f32.mrf.mxu0  ;;  %1280 = vmatpush2.msra.mxu1 %v1225_v32  ;;  %v1329_v32 = vld [vmem:[#allocation9 + $0x78] sm:$0xff] }
 0x185   : > { %1083 = vxpose.xlu0.b32.cont [5/16] %v968_v38, 128  ;;  %1281 = vmatprep.subr.mxu1 %v1224_v34  ;;  %v1325_v34 = vld [vmem:[#allocation9 + $0x58] sm:$0xff] }
 0x186   : > { %v821_v41 = vpop.f32.mrf.mxu0  ;;  %1282 = vmatpush2.msra.mxu1 %v1223_v35 }
 0x187   : > { %v969_v45 = vmax.f32 %v819_v39, %v821_v41  ;;  %1283 = vmatprep.subr.mxu1 %v1222_v36  ;;  %v1221_v39 = vld [vmem:[#allocation6 + $0x1b0] sm:$0xff]  ;;  %v1220_v41 = vld [vmem:[#allocation6 + $0x1a8] sm:$0xff] }
 0x188   : > { %v825_v46 = vpop.f32.mrf.mxu0  ;;  %1284 = vmatpush2.msra.mxu1 %v1221_v39  ;;  %v1324_v36 = vld [vmem:[#allocation9 + $0x50] sm:$0xff]  ;;  %v1317_v39 = vld [vmem:[#allocation9 + $0x18] sm:$0xff] }
 0x189   : > { %1084 = vxpose.xlu0.b32.cont [6/16] %v969_v45, 128  ;;  %1285 = vmatprep.subr.mxu1 %v1220_v41  ;;  %v1441_v41 = vld [vmem:[#allocation9 + $0x3f8] sm:$0xff] }
 0x18a   : > { %v827_v48 = vpop.f32.mrf.mxu0  ;;  %1286 = vmatpush2.msra.mxu1 %v1219_v42 }
 0x18b   : > { %v970_v52 = vmax.f32 %v825_v46, %v827_v48  ;;  %1287 = vmatprep.subr.mxu1 %v1218_v43  ;;  %v1217_v46 = vld [vmem:[#allocation6 + $0x190] sm:$0xff]  ;;  %v1216_v48 = vld [vmem:[#allocation6 + $0x188] sm:$0xff] }
 0x18c   : > { %v831_v53 = vpop.f32.mrf.mxu0  ;;  %1288 = vmatpush2.msra.mxu1 %v1217_v46  ;;  %v1440_v43 = vld [vmem:[#allocation9 + $0x3f0] sm:$0xff]  ;;  %v1433_v46 = vld [vmem:[#allocation9 + $0x3b8] sm:$0xff] }
 0x18d   : > { %1085 = vxpose.xlu0.b32.cont [7/16] %v970_v52, 128  ;;  %1289 = vmatprep.subr.mxu1 %v1216_v48  ;;  %v1213_v52 = vld [vmem:[#allocation6 + $0x170] sm:$0xff] }
 0x18e   : > { %v833_v55 = vpop.f32.mrf.mxu0  ;;  %1290 = vmatpush2.msra.mxu1 %v1215_v50  ;;  %v1432_v48 = vld [vmem:[#allocation9 + $0x3b0] sm:$0xff] }
 0x18f   : > { %v971_v59 = vmax.f32 %v831_v53, %v833_v55  ;;  %1291 = vmatprep.subr.mxu1 %v1214_v51  ;;  %v1212_v53 = vld [vmem:[#allocation6 + $0x168] sm:$0xff]  ;;  %v1210_v55 = vld [vmem:[#allocation6 + $0x158] sm:$0xff] }
 0x190   : > { %v837_v60 = vpop.f32.mrf.mxu0  ;;  %1292 = vmatpush2.msra.mxu1 %v1213_v52  ;;  %v1428_v50 = vld [vmem:[#allocation9 + $0x390] sm:$0xff]  ;;  %v1425_v51 = vld [vmem:[#allocation9 + $0x378] sm:$0xff] }
 0x191   : > { %1086 = vxpose.xlu0.b32.cont [8/16] %v971_v59, 128  ;;  %1293 = vmatprep.subr.mxu1 %v1212_v53  ;;  %v1206_v59 = vld [vmem:[#allocation6 + $0x138] sm:$0xff] }
 0x192   : > { %v839_v62 = vpop.f32.mrf.mxu0  ;;  %1294 = vmatpush2.msra.mxu1 %v1211_v54  ;;  %v1424_v52 = vld [vmem:[#allocation9 + $0x370] sm:$0xff]  ;;  %v1421_v53 = vld [vmem:[#allocation9 + $0x358] sm:$0xff] }
 0x193   : > { %v972_v2 = vmax.f32 %v837_v60, %v839_v62  ;;  %1295 = vmatprep.subr.mxu1 %v1210_v55  ;;  %v1205_v60 = vld [vmem:[#allocation6 + $0x130] sm:$0xff]  ;;  %v1203_v62 = vld [vmem:[#allocation6 + $0x120] sm:$0xff] }
 0x194   : > { %v843_v3 = vpop.f32.mrf.mxu0  ;;  %1296 = vmatpush2.msra.mxu1 %v1209_v56  ;;  %v1420_v55 = vld [vmem:[#allocation9 + $0x350] sm:$0xff]  ;;  %v1417_v56 = vld [vmem:[#allocation9 + $0x338] sm:$0xff] }
 0x195   : > { %1087 = vxpose.xlu0.b32.cont [9/16] %v972_v2, 128  ;;  %1297 = vmatprep.subr.mxu1 %v1208_v57  ;;  %v1199_v2 = vld [vmem:[#allocation6 + $0x100] sm:$0xff]  ;;  %v1416_v57 = vld [vmem:[#allocation9 + $0x330] sm:$0xff] }
 0x196   : > { %v845_v5 = vpop.f32.mrf.mxu0  ;;  %1298 = vmatpush2.msra.mxu1 %v1207_v58  ;;  %v1413_v58 = vld [vmem:[#allocation9 + $0x318] sm:$0xff] }
 0x197   : > { %v973_v9 = vmax.f32 %v843_v3, %v845_v5  ;;  %1299 = vmatprep.subr.mxu1 %v1206_v59  ;;  %v1377_v3 = vld [vmem:[#allocation9 + $0x1f8] sm:$0xff]  ;;  %v1412_v59 = vld [vmem:[#allocation9 + $0x310] sm:$0xff] }
 0x198   : > { %v849_v10 = vpop.f32.mrf.mxu0  ;;  %1300 = vmatpush2.msra.mxu1 %v1205_v60  ;;  %v1373_v5 = vld [vmem:[#allocation9 + $0x1d8] sm:$0xff]  ;;  %1535 = vmatprep.subr.mxu0 %v1377_v3 }
 0x199   : > { %1088 = vxpose.xlu0.b32.cont [10/16] %v973_v9, 128  ;;  %1301 = vmatprep.subr.mxu1 %v1204_v61  ;;  %v1368_v9 = vld [vmem:[#allocation9 + $0x1b0] sm:$0xff]  ;;  %v1409_v61 = vld [vmem:[#allocation9 + $0x2f8] sm:$0xff] }
 0x19a   : > { %v851_v12 = vpop.f32.mrf.mxu0  ;;  %1302 = vmatpush2.msra.mxu1 %v1203_v62  ;;  %1536 = vmatpush1.msra.mxu0 %v1376_v4  ;;  %v1401_v3 = vld [vmem:[#allocation9 + $0x2b8] sm:$0xff]  ;;  %v1400_v4 = vld [vmem:[#allocation9 + $0x2b0] sm:$0xff] }
 0x19b   : > { %v974_v16 = vmax.f32 %v849_v10, %v851_v12  ;;  %1303 = vmatprep.subr.mxu1 %v1202_v63  ;;  %1537 = vmatprep.subr.mxu0 %v1373_v5  ;;  %v1365_v10 = vld [vmem:[#allocation9 + $0x198] sm:$0xff]  ;;  %v1408_v63 = vld [vmem:[#allocation9 + $0x2f0] sm:$0xff] }
 0x19c   : > { %v855_v17 = vpop.f32.mrf.mxu0  ;;  %1304 = vmatpush2.msra.mxu1 %v1201_v0  ;;  %1538 = vmatpush1.msra.mxu0 %v1372_v7  ;;  %v1361_v12 = vld [vmem:[#allocation9 + $0x178] sm:$0xff] }
 0x19d   : > { %1089 = vxpose.xlu0.b32.cont [11/16] %v974_v16, 128  ;;  %1305 = vmatprep.subr.mxu1 %v1200_v1  ;;  %v1357_v16 = vld [vmem:[#allocation9 + $0x158] sm:$0xff]  ;;  %v1404_v1 = vld [vmem:[#allocation9 + $0x2d0] sm:$0xff] }
 0x19e   : > { %v857_v19 = vpop.f32.mrf.mxu0  ;;  %1306 = vmatpush2.msra.mxu1 %v1199_v2  ;;  %1539 = vmatprep.subr.mxu0 %v1369_v8  ;;  %v1405_v0 = vld [vmem:[#allocation9 + $0x2d8] sm:$0xff]  ;;  %v1396_v8 = vld [vmem:[#allocation9 + $0x290] sm:$0xff] }
 0x19f   : > { %v975_v23 = vmax.f32 %v855_v17, %v857_v19  ;;  %1540 = vmatpush1.msra.mxu0 %v1368_v9  ;;  %1464 = vmatprep.subr.mxu1 %v1375_v13  ;;  %v1356_v17 = vld [vmem:[#allocation9 + $0x150] sm:$0xff]  ;;  %v1397_v5 = vld [vmem:[#allocation9 + $0x298] sm:$0xff] }
 0x1a0   : > { %v861_v24 = vpop.f32.mrf.mxu0  ;;  %1541 = vmatprep.subr.mxu0 %v1365_v10  ;;  %v1352_v19 = vld [vmem:[#allocation9 + $0x130] sm:$0xff]  ;;  %v1393_v10 = vld [vmem:[#allocation9 + $0x278] sm:$0xff] }
 0x1a1   : > { %1090 = vxpose.xlu0.b32.cont [12/16] %v975_v23, 128  ;;  %1542 = vmatpush1.msra.mxu0 %v1364_v11  ;;  %v1345_v23 = vld [vmem:[#allocation9 + $0xf8] sm:$0xff]  ;;  %v1392_v11 = vld [vmem:[#allocation9 + $0x270] sm:$0xff] }
 0x1a2   : > { %v863_v26 = vpop.f32.mrf.mxu0  ;;  %1543 = vmatprep.subr.mxu0 %v1361_v12 }
 0x1a3   : > { %v976_v30 = vmax.f32 %v861_v24, %v863_v26  ;;  %1544 = vmatpush1.msra.mxu0 %v1360_v15  ;;  %v1344_v24 = vld [vmem:[#allocation9 + $0xf0] sm:$0xff] }
 0x1a4   : > { %v867_v31 = vpop.f32.mrf.mxu0  ;;  %1545 = vmatprep.subr.mxu0 %v1357_v16  ;;  %v1340_v26 = vld [vmem:[#allocation9 + $0xd0] sm:$0xff] }
 0x1a5   : > { %1091 = vxpose.xlu0.b32.cont [13/16] %v976_v30, 128  ;;  %1546 = vmatpush1.msra.mxu0 %v1356_v17  ;;  %v1333_v30 = vld [vmem:[#allocation9 + $0x98] sm:$0xff] }
 0x1a6   : > { %v869_v33 = vpop.f32.mrf.mxu0  ;;  %1547 = vmatprep.subr.mxu0 %v1353_v18 }
 0x1a7   : > { %v977_v37 = vmax.f32 %v867_v31, %v869_v33  ;;  %1548 = vmatpush1.msra.mxu0 %v1352_v19  ;;  %v1332_v31 = vld [vmem:[#allocation9 + $0x90] sm:$0xff] }
 0x1a8   : > { %v873_v38 = vpop.f32.mrf.mxu0  ;;  %1549 = vmatprep.subr.mxu0 %v1349_v20  ;;  %v1328_v33 = vld [vmem:[#allocation9 + $0x70] sm:$0xff] }
 0x1a9   : > { %1092 = vxpose.xlu0.b32.cont [14/16] %v977_v37, 128  ;;  %1550 = vmatpush1.msra.mxu0 %v1348_v22  ;;  %v1321_v37 = vld [vmem:[#allocation9 + $0x38] sm:$0xff] }
 0x1aa   : > { %v875_v40 = vpop.f32.mrf.mxu0  ;;  %1551 = vmatprep.subr.mxu0 %v1345_v23 }
 0x1ab   : > { %v978_v44 = vmax.f32 %v873_v38, %v875_v40  ;;  %1552 = vmatpush1.msra.mxu0 %v1344_v24  ;;  %v1320_v38 = vld [vmem:[#allocation9 + $0x30] sm:$0xff] }
 0x1ac   : > { %v879_v45 = vpop.f32.mrf.mxu0  ;;  %1553 = vmatprep.subr.mxu0 %v1341_v25  ;;  %v1316_v40 = vld [vmem:[#allocation9 + $0x10] sm:$0xff] }
 0x1ad   : > { %1093 = vxpose.xlu0.b32.cont [15/16] %v978_v44, 128  ;;  %1554 = vmatpush1.msra.mxu0 %v1340_v26  ;;  %v1437_v44 = vld [vmem:[#allocation9 + $0x3d8] sm:$0xff] }
 0x1ae   : > { %v881_v47 = vpop.f32.mrf.mxu0  ;;  %1555 = vmatprep.subr.mxu0 %v1337_v27 }
 0x1af   : > { %v979_v49 = vmax.f32 %v879_v45, %v881_v47  ;;  %1556 = vmatpush1.msra.mxu0 %v1336_v29  ;;  %v1436_v45 = vld [vmem:[#allocation9 + $0x3d0] sm:$0xff] }
 0x1b0   : > { %1557 = vmatprep.subr.mxu0 %v1333_v30 }
 0x1b1   : > { %1094 = vxpose.xlu0.b32.end [16/16] %v979_v49, 128  ;;  %v2904_v6 = vpop.trf.xlu1  ;;  %1558 = vmatpush1.msra.mxu0 %v1332_v31  ;;  %v1429_v49 = vld [vmem:[#allocation9 + $0x398] sm:$0xff] }
 0x1b2   : > { %1559 = vmatprep.subr.mxu0 %v1329_v32 }
 0x1b3   : > { %1560 = vmatpush1.msra.mxu0 %v1328_v33 }
 0x1b4   : > { %1561 = vmatprep.subr.mxu0 %v1325_v34 }
 0x1b5   : > { %v2906_v14 = vpop.trf.xlu1  ;;  %1562 = vmatpush1.msra.mxu0 %v1324_v36 }
 0x1b6   : > { %1563 = vmatprep.subr.mxu0 %v1321_v37 }
 0x1b7   : > { %1564 = vmatpush1.msra.mxu0 %v1320_v38 }
 0x1b8   : > { %1565 = vmatprep.subr.mxu0 %v1317_v39 }
 0x1b9   : > { %v2908_v21 = vpop.trf.xlu1  ;;  %1566 = vmatpush1.msra.mxu0 %v1316_v40 }
 0x1ba   : > { %1567 = vmatprep.subr.mxu0 %v1441_v41  ;;  %v1111_v18 = vmax.f32 %v2904_v6, %v2908_v21 }
 0x1bb   : > { %1568 = vmatpush2.msra.mxu0 %v1440_v43 }
 0x1bc   : > { %1569 = vmatprep.subr.mxu0 %v1437_v44 }
 0x1bd   : > { %v2910_v28 = vpop.trf.xlu1  ;;  %1570 = vmatpush2.msra.mxu0 %v1436_v45 }
 0x1be   : > { %1571 = vmatprep.subr.mxu0 %v1433_v46  ;;  %v1112_v19 = vmax.f32 %v2906_v14, %v2910_v28 }
 0x1bf   : > { %1572 = vmatpush2.msra.mxu0 %v1432_v48 }
 0x1c0   : > { %1573 = vmatprep.subr.mxu0 %v1429_v49 }
 0x1c1   : > { %v2912_v35 = vpop.trf.xlu1  ;;  %1574 = vmatpush2.msra.mxu0 %v1428_v50 }
 0x1c2   : > { %1575 = vmatprep.subr.mxu0 %v1425_v51  ;;  %v1113_v23 = vmax.f32 %v1111_v18, %v2912_v35 }
 0x1c3   : > { %1576 = vmatpush2.msra.mxu0 %v1424_v52 }
 0x1c4   : > { %1577 = vmatprep.subr.mxu0 %v1421_v53 }
 0x1c5   : > { %v2914_v42 = vpop.trf.xlu1  ;;  %1578 = vmatpush2.msra.mxu0 %v1420_v55 }
 0x1c6   : > { %1579 = vmatprep.subr.mxu0 %v1417_v56  ;;  %v1114_v24 = vmax.f32 %v1112_v19, %v2914_v42  ;;  %v1374_v19 = vld [vmem:[#allocation9 + $0x1e0] sm:$0xff] }
 0x1c7   : > { %1580 = vmatpush2.msra.mxu0 %v1416_v57 }
 0x1c8   : > { %1581 = vmatprep.subr.mxu0 %v1413_v58 }
 0x1c9   : > { %v2916_v47 = vpop.trf.xlu1  ;;  %1582 = vmatpush2.msra.mxu0 %v1412_v59 }
 0x1ca   : > { %1583 = vmatprep.subr.mxu0 %v1409_v61  ;;  %v1115_v26 = vmax.f32 %v1113_v23, %v2916_v47  ;;  %v1367_v23 = vld [vmem:[#allocation9 + $0x1a8] sm:$0xff] }
 0x1cb   : > { %1584 = vmatpush2.msra.mxu0 %v1408_v63 }
 0x1cc   : > { %1585 = vmatprep.subr.mxu0 %v1405_v0 }
 0x1cd   : > { %v1070_v54 = vpop.trf.xlu1  ;;  %1586 = vmatpush2.msra.mxu0 %v1404_v1 }
 0x1ce   : > { %1587 = vmatprep.subr.mxu0 %v1401_v3  ;;  %v1116_v27 = vmax.f32 %v1114_v24, %v1070_v54  ;;  %v1366_v24 = vld [vmem:[#allocation9 + $0x1a0] sm:$0xff] }
 0x1cf   : > { %1588 = vmatpush2.msra.mxu0 %v1400_v4 }
 0x1d0   : > { %1589 = vmatprep.subr.mxu0 %v1397_v5 }
 0x1d1   : > { %v1071_v62 = vpop.trf.xlu1  ;;  %1590 = vmatpush2.msra.mxu0 %v1396_v8 }
 0x1d2   : > { %1591 = vmatprep.subr.mxu0 %v1393_v10  ;;  %v1117_v31 = vmax.f32 %v1115_v26, %v1071_v62  ;;  %v1155_v62 = vlaneseq  ;;  %v1153_v10 = vld [vmem:[#allocation3] sm:$0x3]  ;;  %v1362_v26 = vld [vmem:[#allocation9 + $0x180] sm:$0xff] }
 0x1d3   : > { %1592 = vmatpush2.msra.mxu0 %v1392_v11 }
 0x1d5   : > { %v1072_v7 = vpop.trf.xlu1 }
 0x1d6   : > { %v1118_v32 = vmax.f32 %v1116_v27, %v1072_v7  ;;  %v1359_v27 = vld [vmem:[#allocation9 + $0x168] sm:$0xff] }
 0x1d9   : > { %v1073_v13 = vpop.trf.xlu1 }
 0x1da   : > { %v1119_v6 = vmax.f32 %v1117_v31, %v1073_v13  ;;  %v1354_v31 = vld [vmem:[#allocation9 + $0x140] sm:$0xff] }
 0x1dd   : > { %v1074_v16 = vpop.trf.xlu1 }
 0x1de   : > { %v1120_v21 = vmax.f32 %v1118_v32, %v1074_v16  ;;  %v1351_v32 = vld [vmem:[#allocation9 + $0x128] sm:$0xff] }
 0x1e1   : > { %v1075_v22 = vpop.trf.xlu1 }
 0x1e2   : > { %v1121_v14 = vmax.f32 %v1119_v6, %v1075_v22  ;;  %v1370_v22 = vld [vmem:[#allocation9 + $0x1c0] sm:$0xff] }
 0x1e3   : > { %v1346_v6 = vld [vmem:[#allocation9 + $0x100] sm:$0xff] }
 0x1e5   : > { %v1076_v29 = vpop.trf.xlu1 }
 0x1e6   : > { %v1122_v28 = vmax.f32 %v1120_v21, %v1076_v29  ;;  %v1358_v29 = vld [vmem:[#allocation9 + $0x160] sm:$0xff]  ;;  %v1343_v21 = vld [vmem:[#allocation9 + $0xe8] sm:$0xff] }
 0x1e9   : > { %v1077_v34 = vpop.trf.xlu1 }
 0x1ea   : > { %v1123_v35 = vmax.f32 %v1121_v14, %v1077_v34  ;;  %v1347_v34 = vld [vmem:[#allocation9 + $0x108] sm:$0xff] }
 0x1eb   : > { %v1339_v14 = vld [vmem:[#allocation9 + $0xc8] sm:$0xff] }
 0x1ed   : > { %v1078_v37 = vpop.trf.xlu1 }
 0x1ee   : > { %v1124_v39 = vmax.f32 %v1122_v28, %v1078_v37  ;;  %v1338_v28 = vld [vmem:[#allocation9 + $0xc0] sm:$0xff]  ;;  %v1335_v37 = vld [vmem:[#allocation9 + $0xa8] sm:$0xff] }
 0x1f0   : > { %v1125_v43 = vmax.f32 %v1123_v35, %v1124_v39  ;;  %v1331_v35 = vld [vmem:[#allocation9 + $0x88] sm:$0xff]  ;;  %v1330_v39 = vld [vmem:[#allocation9 + $0x80] sm:$0xff] }
 0x1f1   : > { %v1095_v60 = vpop.trf.xlu0 }
 0x1f2   : > { %v1126_v49 = vrot.slane %v1125_v43, 4 }
 0x1f4   : > { %v1127_v55 = vmax.f32 %v1125_v43, %v1126_v49  ;;  %v1322_v43 = vld [vmem:[#allocation9 + $0x40] sm:$0xff] }
 0x1f5   : > { %v1096_v2 = vpop.trf.xlu0  ;;  %v1438_v49 = vld [vmem:[#allocation9 + $0x3e0] sm:$0xff] }
 0x1f9   : > { %v1097_v9 = vpop.trf.xlu0 }
 0x1fa   : > { %v1132_v41 = vmax.f32 %v1095_v60, %v1097_v9  ;;  %v1128_v60 = vrot.slane %v1127_v55, 2 }
 0x1fc   : > { %v1129_v1 = vmax.f32 %v1127_v55, %v1128_v60  ;;  %v1426_v55 = vld [vmem:[#allocation9 + $0x380] sm:$0xff] }
 0x1fd   : > { %v1098_v12 = vpop.trf.xlu0  ;;  %v1414_v60 = vld [vmem:[#allocation9 + $0x320] sm:$0xff] }
 0x1fe   : > { %v1133_v42 = vmax.f32 %v1096_v2, %v1098_v12  ;;  %v2925_v2 = vshrl.u32 %v1155_v62, 7  ;;  %v1130_v8 = vrot.slane %v1129_v1, 1  ;;  %v1411_v62 = vld [vmem:[#allocation9 + $0x308] sm:$0xff] }
 0x200   : > { %v2928_v5 = vsub.s32 1, %v2925_v2  ;;  %v2931_v7 = vsub.s32 0, %v2925_v2 }
 0x201   : > { %v1099_v15 = vpop.trf.xlu0 }
 0x202   : > { %v1134_v44 = vmax.f32 %v1132_v41, %v1099_v15  ;;  %v1162_v12 = vrot.slane %v1153_v10, %v2928_v5  ;;  %v1158_v13 = vrot.slane %v1153_v10, %v2931_v7  ;;  %v1131_v15 = vmax.f32 %v1129_v1, %v1130_v8  ;;  %v1326_v41 = vld [vmem:[#allocation9 + $0x60] sm:$0xff]  ;;  %v1399_v8 = vld [vmem:[#allocation9 + $0x2a8] sm:$0xff] }
 0x203   : > { %v1406_v1 = vld [vmem:[#allocation9 + $0x2e0] sm:$0xff]  ;;  %v1395_v10 = vld [vmem:[#allocation9 + $0x288] sm:$0xff] }
 0x204   : > { %v2937_v18 = vadd.f32 %v1158_v13, %v1131_v15  ;;  %v1390_v13 = vld [vmem:[#allocation9 + $0x260] sm:$0xff]  ;;  %v1387_v15 = vld [vmem:[#allocation9 + $0x248] sm:$0xff] }
 0x205   : > { %v1100_v17 = vpop.trf.xlu0 }
 0x206   : > { %v1135_v45 = vmax.f32 %v1133_v42, %v1100_v17  ;;  %v1323_v42 = vld [vmem:[#allocation9 + $0x48] sm:$0xff] }
 0x209   : > { %v1101_v20 = vpop.trf.xlu0 }
 0x20a   : > { %v1136_v47 = vmax.f32 %v1134_v44, %v1101_v20  ;;  %v1371_v20 = vld [vmem:[#allocation9 + $0x1c8] sm:$0xff] }
 0x20b   : > { %v1319_v44 = vld [vmem:[#allocation9 + $0x28] sm:$0xff] }
 0x20d   : > { %v1102_v25 = vpop.trf.xlu0 }
 0x20e   : > { %v1137_v48 = vmax.f32 %v1135_v45, %v1102_v25  ;;  %v1363_v25 = vld [vmem:[#allocation9 + $0x188] sm:$0xff]  ;;  %v1318_v45 = vld [vmem:[#allocation9 + $0x20] sm:$0xff] }
 0x211   : > { %v1103_v30 = vpop.trf.xlu0 }
 0x212   : > { %v1138_v50 = vmax.f32 %v1136_v47, %v1103_v30  ;;  %v1355_v30 = vld [vmem:[#allocation9 + $0x148] sm:$0xff]  ;;  %v1314_v47 = vld [vmem:[#allocation9] sm:$0xff] }
 0x215   : > { %v1104_v33 = vpop.trf.xlu0 }
 0x216   : > { %v1139_v51 = vmax.f32 %v1137_v48, %v1104_v33  ;;  %v1350_v33 = vld [vmem:[#allocation9 + $0x120] sm:$0xff]  ;;  %v1439_v48 = vld [vmem:[#allocation9 + $0x3e8] sm:$0xff] }
 0x219   : > { %v1105_v36 = vpop.trf.xlu0 }
 0x21a   : > { %v1140_v53 = vmax.f32 %v1138_v50, %v1105_v36  ;;  %v1342_v36 = vld [vmem:[#allocation9 + $0xe0] sm:$0xff]  ;;  %v1435_v50 = vld [vmem:[#allocation9 + $0x3c8] sm:$0xff] }
 0x21d   : > { %v1106_v38 = vpop.trf.xlu0 }
 0x21e   : > { %v1141_v54 = vmax.f32 %v1139_v51, %v1106_v38  ;;  %v1334_v38 = vld [vmem:[#allocation9 + $0xa0] sm:$0xff] }
 0x21f   : > { %v1434_v51 = vld [vmem:[#allocation9 + $0x3c0] sm:$0xff] }
 0x221   : > { %v1107_v40 = vpop.trf.xlu0 }
 0x222   : > { %v1142_v56 = vmax.f32 %v1140_v53, %v1107_v40  ;;  %v1327_v40 = vld [vmem:[#allocation9 + $0x68] sm:$0xff]  ;;  %v1430_v53 = vld [vmem:[#allocation9 + $0x3a0] sm:$0xff] }
 0x225   : > { %v1108_v46 = vpop.trf.xlu0 }
 0x226   : > { %v1143_v57 = vmax.f32 %v1141_v54, %v1108_v46  ;;  %v1315_v46 = vld [vmem:[#allocation9 + $0x8] sm:$0xff] }
 0x227   : > { %v1427_v54 = vld [vmem:[#allocation9 + $0x388] sm:$0xff] }
 0x229   : > { %v1109_v52 = vpop.trf.xlu0 }
 0x22a   : > { %v1144_v59 = vmax.f32 %v1142_v56, %v1109_v52  ;;  %v1431_v52 = vld [vmem:[#allocation9 + $0x3a8] sm:$0xff] }
 0x22b   : > { %v1423_v56 = vld [vmem:[#allocation9 + $0x368] sm:$0xff] }
 0x22d   : > { %v1110_v58 = vpop.trf.xlu0 }
 0x22e   : > { %v1145_v61 = vmax.f32 %v1143_v57, %v1110_v58  ;;  %v1422_v57 = vld [vmem:[#allocation9 + $0x360] sm:$0xff]  ;;  %v1419_v58 = vld [vmem:[#allocation9 + $0x348] sm:$0xff] }
 0x230   : > { %v1146_v63 = vmax.f32 %v1144_v59, %v1145_v61  ;;  %v1418_v59 = vld [vmem:[#allocation9 + $0x340] sm:$0xff]  ;;  %v1415_v61 = vld [vmem:[#allocation9 + $0x328] sm:$0xff] }
 0x232   : > { %v1147_v0 = vrot.slane %v1146_v63, 4 }
 0x234   : > { %v1148_v3 = vmax.f32 %v1146_v63, %v1147_v0  ;;  %v1410_v63 = vld [vmem:[#allocation9 + $0x300] sm:$0xff]  ;;  %v1407_v0 = vld [vmem:[#allocation9 + $0x2e8] sm:$0xff] }
 0x236   : > { %v1149_v4 = vrot.slane %v1148_v3, 2 }
 0x238   : > { %v1150_v9 = vmax.f32 %v1148_v3, %v1149_v4  ;;  %v1403_v3 = vld [vmem:[#allocation9 + $0x2c8] sm:$0xff]  ;;  %v1402_v4 = vld [vmem:[#allocation9 + $0x2c0] sm:$0xff] }
 0x23a   : > { %v1151_v11 = vrot.slane %v1150_v9, 1 }
 0x23c   : > { %v1152_v16 = vmax.f32 %v1150_v9, %v1151_v11  ;;  %v1398_v9 = vld [vmem:[#allocation9 + $0x2a0] sm:$0xff] }
 0x23d   : > { %v1394_v11 = vld [vmem:[#allocation9 + $0x280] sm:$0xff] }
 0x23e   : > { %v2935_v17 = vadd.f32 %v1162_v12, %v1152_v16  ;;  %v1391_v12 = vld [vmem:[#allocation9 + $0x268] sm:$0xff]  ;;  %v1389_v16 = vld [vmem:[#allocation9 + $0x258] sm:$0xff] }
 0x23f   : > { %1593 = vmatprep.subr.mxu0 %v1389_v16  ;;  %v1695_v16 = vld [vmem:[#allocation11 + $0x1a8] sm:$0xff] }
 0x240   : > { %1307 = vmatprep.mubr.f32.mxu1 %v2935_v17 }
 0x241   : > { %1308 = vmatmul.mubr.f32.vlgmr.msra.gmra.mxu1 %v2937_v18 }
 0x242   : > { %1465 = vmatpush1.msra.mxu1 %v1374_v19  ;;  %v1386_v19 = vld [vmem:[#allocation9 + $0x240] sm:$0xff] }
 0x243   : > { %1466 = vmatprep.subr.mxu1 %v1371_v20  ;;  %v1388_v20 = vld [vmem:[#allocation9 + $0x250] sm:$0xff] }
 0x244   : > { %1467 = vmatpush1.msra.mxu1 %v1370_v22  ;;  %1594 = vmatpush2.msra.mxu0 %v1388_v20  ;;  %v1383_v22 = vld [vmem:[#allocation9 + $0x228] sm:$0xff] }
 0x245   : > { %1468 = vmatprep.subr.mxu1 %v1367_v23  ;;  %v1385_v23 = vld [vmem:[#allocation9 + $0x238] sm:$0xff]  ;;  %v1679_v20 = vld [vmem:[#allocation11 + $0x128] sm:$0xff] }
 0x246   : > { %1469 = vmatpush1.msra.mxu1 %v1366_v24  ;;  %1595 = vmatprep.subr.mxu0 %v1385_v23  ;;  %v1382_v24 = vld [vmem:[#allocation9 + $0x220] sm:$0xff] }
 0x247   : > { %1470 = vmatprep.subr.mxu1 %v1363_v25  ;;  %v1384_v25 = vld [vmem:[#allocation9 + $0x230] sm:$0xff]  ;;  %v1694_v23 = vld [vmem:[#allocation11 + $0x1a0] sm:$0xff] }
 0x248   : > { %1471 = vmatpush1.msra.mxu1 %v1362_v26  ;;  %1596 = vmatpush2.msra.mxu0 %v1384_v25  ;;  %v1379_v26 = vld [vmem:[#allocation9 + $0x208] sm:$0xff]  ;;  %v1678_v25 = vld [vmem:[#allocation11 + $0x120] sm:$0xff] }
 0x249   : > { %1472 = vmatprep.subr.mxu1 %v1359_v27  ;;  %v1381_v27 = vld [vmem:[#allocation9 + $0x218] sm:$0xff] }
 0x24a   : > { %1473 = vmatpush1.msra.mxu1 %v1358_v29  ;;  %v1378_v29 = vld [vmem:[#allocation9 + $0x200] sm:$0xff]  ;;  %1597 = vmatprep.subr.mxu0 %v1381_v27  ;;  %v1645_v27 = vld [vmem:[#allocation11 + $0x18] sm:$0xff] }
 0x24b   : > { %1474 = vmatprep.subr.mxu1 %v1355_v30  ;;  %v1380_v30 = vld [vmem:[#allocation9 + $0x210] sm:$0xff] }
 0x24c   : > { %1475 = vmatpush1.msra.mxu1 %v1354_v31  ;;  %1598 = vmatpush2.msra.mxu0 %v1380_v30  ;;  %v1673_v31 = vld [vmem:[#allocation11 + $0xf8] sm:$0xff]  ;;  %v1660_v30 = vld [vmem:[#allocation11 + $0x90] sm:$0xff] }
 0x24d   : > { %1476 = vmatprep.subr.mxu1 %v1351_v32  ;;  %v1705_v32 = vld [vmem:[#allocation11 + $0x1f8] sm:$0xff] }
 0x24e   : > { %1477 = vmatpush1.msra.mxu1 %v1350_v33  ;;  %2141 = vmatprep.subr.mxu0 %v1705_v32  ;;  %v1231_v33 = vld [vmem:[#allocation8] sm:$0x3]  ;;  %v1644_v32 = vld [vmem:[#allocation11 + $0x10] sm:$0xff] }
 0x24f   : > { %1478 = vmatprep.subr.mxu1 %v1347_v34  ;;  %v1240_v34 = vrot.slane %v1231_v33, %v2928_v5 }
 0x250   : > { %1479 = vmatpush1.msra.mxu1 %v1346_v6  ;;  %v1236_v6 = vrot.slane %v1231_v33, %v2931_v7  ;;  %v1692_v33 = vld [vmem:[#allocation11 + $0x190] sm:$0xff] }
 0x251   : > { %1480 = vmatprep.subr.mxu1 %v1343_v21 }
 0x252   : > { %1481 = vmatpush1.msra.mxu1 %v1342_v36 }
 0x253   : > { %1482 = vmatprep.subr.mxu1 %v1339_v14 }
 0x254   : > { %1483 = vmatpush1.msra.mxu1 %v1338_v28 }
 0x255   : > { %1484 = vmatprep.subr.mxu1 %v1335_v37  ;;  %v1657_v37 = vld [vmem:[#allocation11 + $0x78] sm:$0xff] }
 0x256   : > { %1485 = vmatpush1.msra.mxu1 %v1334_v38  ;;  %v1689_v38 = vld [vmem:[#allocation11 + $0x178] sm:$0xff] }
 0x257   : > { %1486 = vmatprep.subr.mxu1 %v1331_v35  ;;  %v1672_v35 = vld [vmem:[#allocation11 + $0xf0] sm:$0xff] }
 0x258   : > { %1487 = vmatpush1.msra.mxu1 %v1330_v39  ;;  %v1704_v39 = vld [vmem:[#allocation11 + $0x1f0] sm:$0xff] }
 0x259   : > { %1488 = vmatprep.subr.mxu1 %v1327_v40  ;;  %v1656_v40 = vld [vmem:[#allocation11 + $0x70] sm:$0xff] }
 0x25a   : > { %1489 = vmatpush1.msra.mxu1 %v1326_v41  ;;  %v1688_v41 = vld [vmem:[#allocation11 + $0x170] sm:$0xff] }
 0x25b   : > { %1490 = vmatprep.subr.mxu1 %v1323_v42  ;;  %v1671_v42 = vld [vmem:[#allocation11 + $0xe8] sm:$0xff] }
 0x25c   : > { %1491 = vmatpush1.msra.mxu1 %v1322_v43  ;;  %v1703_v43 = vld [vmem:[#allocation11 + $0x1e8] sm:$0xff] }
 0x25d   : > { %1492 = vmatprep.subr.mxu1 %v1319_v44  ;;  %v1655_v44 = vld [vmem:[#allocation11 + $0x68] sm:$0xff] }
 0x25e   : > { %1493 = vmatpush1.msra.mxu1 %v1318_v45  ;;  %v1687_v45 = vld [vmem:[#allocation11 + $0x168] sm:$0xff] }
 0x25f   : > { %1494 = vmatprep.subr.mxu1 %v1315_v46  ;;  %v1670_v46 = vld [vmem:[#allocation11 + $0xe0] sm:$0xff] }
 0x260   : > { %1495 = vmatpush1.msra.mxu1 %v1314_v47  ;;  %v1702_v47 = vld [vmem:[#allocation11 + $0x1e0] sm:$0xff] }
 0x261   : > { %1496 = vmatprep.subr.mxu1 %v1439_v48  ;;  %v1654_v48 = vld [vmem:[#allocation11 + $0x60] sm:$0xff] }
 0x262   : > { %1497 = vmatpush2.msra.mxu1 %v1438_v49  ;;  %v1686_v49 = vld [vmem:[#allocation11 + $0x160] sm:$0xff] }
 0x263   : > { %1498 = vmatprep.subr.mxu1 %v1435_v50  ;;  %v1669_v50 = vld [vmem:[#allocation11 + $0xd8] sm:$0xff] }
 0x264   : > { %1499 = vmatpush2.msra.mxu1 %v1434_v51  ;;  %v1701_v51 = vld [vmem:[#allocation11 + $0x1d8] sm:$0xff] }
 0x265   : > { %1500 = vmatprep.subr.mxu1 %v1431_v52  ;;  %v1653_v52 = vld [vmem:[#allocation11 + $0x58] sm:$0xff] }
 0x266   : > { %1501 = vmatpush2.msra.mxu1 %v1430_v53  ;;  %v1685_v53 = vld [vmem:[#allocation11 + $0x158] sm:$0xff] }
 0x267   : > { %1502 = vmatprep.subr.mxu1 %v1427_v54  ;;  %v1668_v54 = vld [vmem:[#allocation11 + $0xd0] sm:$0xff] }
 0x268   : > { %1503 = vmatpush2.msra.mxu1 %v1426_v55  ;;  %v1700_v55 = vld [vmem:[#allocation11 + $0x1d0] sm:$0xff] }
 0x269   : > { %1504 = vmatprep.subr.mxu1 %v1423_v56  ;;  %v1652_v56 = vld [vmem:[#allocation11 + $0x50] sm:$0xff] }
 0x26a   : > { %1505 = vmatpush2.msra.mxu1 %v1422_v57  ;;  %v1684_v57 = vld [vmem:[#allocation11 + $0x150] sm:$0xff] }
 0x26b   : > { %1506 = vmatprep.subr.mxu1 %v1419_v58  ;;  %v1667_v58 = vld [vmem:[#allocation11 + $0xc8] sm:$0xff] }
 0x26c   : > { %1507 = vmatpush2.msra.mxu1 %v1418_v59  ;;  %v1699_v59 = vld [vmem:[#allocation11 + $0x1c8] sm:$0xff] }
 0x26d   : > { %1508 = vmatprep.subr.mxu1 %v1415_v61  ;;  %v1651_v61 = vld [vmem:[#allocation11 + $0x48] sm:$0xff] }
 0x26e   : > { %1509 = vmatpush2.msra.mxu1 %v1414_v60  ;;  %v1683_v60 = vld [vmem:[#allocation11 + $0x148] sm:$0xff] }
 0x26f   : > { %1510 = vmatprep.subr.mxu1 %v1411_v62  ;;  %v1666_v62 = vld [vmem:[#allocation11 + $0xc0] sm:$0xff] }
 0x270   : > { %1511 = vmatpush2.msra.mxu1 %v1410_v63  ;;  %v1698_v63 = vld [vmem:[#allocation11 + $0x1c0] sm:$0xff] }
 0x271   : > { %1512 = vmatprep.subr.mxu1 %v1407_v0  ;;  %v1650_v0 = vld [vmem:[#allocation11 + $0x40] sm:$0xff] }
 0x272   : > { %1513 = vmatpush2.msra.mxu1 %v1406_v1  ;;  %v1682_v1 = vld [vmem:[#allocation11 + $0x140] sm:$0xff] }
 0x273   : > { %1514 = vmatprep.subr.mxu1 %v1403_v3  ;;  %v1665_v3 = vld [vmem:[#allocation11 + $0xb8] sm:$0xff] }
 0x274   : > { %1515 = vmatpush2.msra.mxu1 %v1402_v4  ;;  %v1697_v4 = vld [vmem:[#allocation11 + $0x1b8] sm:$0xff] }
 0x275   : > { %1516 = vmatprep.subr.mxu1 %v1399_v8  ;;  %v1649_v8 = vld [vmem:[#allocation11 + $0x38] sm:$0xff] }
 0x276   : > { %1517 = vmatpush2.msra.mxu1 %v1398_v9  ;;  %v1681_v9 = vld [vmem:[#allocation11 + $0x138] sm:$0xff] }
 0x277   : > { %1518 = vmatprep.subr.mxu1 %v1395_v10  ;;  %v1664_v10 = vld [vmem:[#allocation11 + $0xb0] sm:$0xff] }
 0x278   : > { %1519 = vmatpush2.msra.mxu1 %v1394_v11  ;;  %v1696_v11 = vld [vmem:[#allocation11 + $0x1b0] sm:$0xff] }
 0x279   : > { %1520 = vmatprep.subr.mxu1 %v1391_v12  ;;  %v1648_v12 = vld [vmem:[#allocation11 + $0x30] sm:$0xff] }
 0x27a   : > { %1521 = vmatpush2.msra.mxu1 %v1390_v13  ;;  %v1680_v13 = vld [vmem:[#allocation11 + $0x130] sm:$0xff] }
 0x27b   : > { %1522 = vmatprep.subr.mxu1 %v1387_v15  ;;  %v1663_v15 = vld [vmem:[#allocation11 + $0xa8] sm:$0xff] }
 0x27c   : > { %1523 = vmatpush2.msra.mxu1 %v1386_v19  ;;  %v1647_v19 = vld [vmem:[#allocation11 + $0x28] sm:$0xff] }
 0x27d   : > { %1524 = vmatprep.subr.mxu1 %v1383_v22  ;;  %v1662_v22 = vld [vmem:[#allocation11 + $0xa0] sm:$0xff] }
 0x27e   : > { %1525 = vmatpush2.msra.mxu1 %v1382_v24  ;;  %v1646_v24 = vld [vmem:[#allocation11 + $0x20] sm:$0xff] }
 0x27f   : > { %1526 = vmatprep.subr.mxu1 %v1379_v26  ;;  %v1661_v26 = vld [vmem:[#allocation11 + $0x98] sm:$0xff] }
 0x280   : > { %1527 = vmatpush2.msra.mxu1 %v1378_v29  ;;  %v1693_v29 = vld [vmem:[#allocation11 + $0x198] sm:$0xff] }
 0x281   : > { %2106 = vmatprep.subr.mxu1 %v1673_v31  ;;  %v1677_v31 = vld [vmem:[#allocation11 + $0x118] sm:$0xff] }
 0x301   : > { %v1309_v21 = vpop.f32.mrf.mxu1 }
 0x302   : > { %v1310_v28 = vadd.f32 %v1309_v21, %v1236_v6  ;;  %v1676_v6 = vld [vmem:[#allocation11 + $0x110] sm:$0xff]  ;;  %v1643_v21 = vld [vmem:[#allocation11 + $0x8] sm:$0xff] }
 0x303   : > { %v1311_v36 = vpop.f32.mrf.mxu1 }
 0x304   : > { %v1312_v14 = vadd.f32 %v1311_v36, %v1240_v34  ;;  %v1659_v34 = vld [vmem:[#allocation11 + $0x88] sm:$0xff] }
 0x305   : > { %v1691_v36 = vld [vmem:[#allocation11 + $0x188] sm:$0xff] }
 0x306   : > { %1528 = vmatprep.mubr.f32.mxu1 %v1312_v14  ;;  %1599 = vmatprep.mubr.f32.mxu0 %v1312_v14  ;;  %v1658_v14 = vld [vmem:[#allocation11 + $0x80] sm:$0xff] }
 0x307   : > { %1529 = vmatmul.mubr.f32.vlgmr.msra.gmra.mxu1 %v1310_v28  ;;  %1600 = vmatmul.mubr.f32.vlgmr.msra.gmra.mxu0 %v1310_v28  ;;  %v1675_v28 = vld [vmem:[#allocation11 + $0x108] sm:$0xff] }
 0x308   : > { %2107 = vmatpush3.msra.mxu1 %v1657_v37  ;;  %2142 = vmatpush3.msra.mxu0 %v1689_v38  ;;  %v1642_v37 = vld [vmem:[#allocation11] sm:$0xff] }
 0x309   : > { %2108 = vmatprep.subr.mxu1 %v1672_v35  ;;  %2143 = vmatprep.subr.mxu0 %v1704_v39  ;;  %v1690_v38 = vld [vmem:[#allocation11 + $0x180] sm:$0xff]  ;;  %v1641_v39 = vld [vmem:[%s3097_s7 + $0xf8] sm:$0xff] }
 0x30a   : > { %2109 = vmatpush3.msra.mxu1 %v1656_v40  ;;  %2144 = vmatpush3.msra.mxu0 %v1688_v41  ;;  %v1674_v35 = vld [vmem:[#allocation11 + $0x100] sm:$0xff]  ;;  %v1454_v40 = vsub.s32 2, %v2925_v2  ;;  %v1442_v41 = vld [vmem:[%s3096_s6] sm:$0xf] }
 0x30b   : > { %2110 = vmatprep.subr.mxu1 %v1671_v42  ;;  %2145 = vmatprep.subr.mxu0 %v1703_v43  ;;  %v1458_v42 = vsub.s32 3, %v2925_v2  ;;  %v1447_v43 = vrot.slane %v1442_v41, %v2931_v7  ;;  %v1625_v2 = vld [vmem:[%s3097_s7 + $0x78] sm:$0xff]  ;;  %v1624_v7 = vld [vmem:[%s3097_s7 + $0x70] sm:$0xff] }
 0x30c   : > { %2111 = vmatpush3.msra.mxu1 %v1655_v44  ;;  %2146 = vmatpush3.msra.mxu0 %v1687_v45  ;;  %v1455_v44 = vrot.slane %v1442_v41, %v1454_v40  ;;  %v1451_v45 = vrot.slane %v1442_v41, %v2928_v5  ;;  %v1640_v5 = vld [vmem:[%s3097_s7 + $0xf0] sm:$0xff] }
 0x30d   : > { %2112 = vmatprep.subr.mxu1 %v1670_v46  ;;  %2147 = vmatprep.subr.mxu0 %v1702_v47  ;;  %v1459_v46 = vrot.slane %v1442_v41, %v1458_v42 }
 0x30e   : > { %2113 = vmatpush3.msra.mxu1 %v1654_v48  ;;  %2148 = vmatpush3.msra.mxu0 %v1686_v49 }
 0x30f   : > { %2114 = vmatprep.subr.mxu1 %v1669_v50  ;;  %2149 = vmatprep.subr.mxu0 %v1701_v51 }
 0x310   : > { %2115 = vmatpush3.msra.mxu1 %v1653_v52  ;;  %2150 = vmatpush3.msra.mxu0 %v1685_v53 }
 0x311   : > { %2116 = vmatprep.subr.mxu1 %v1668_v54  ;;  %2151 = vmatprep.subr.mxu0 %v1700_v55 }
 0x312   : > { %2117 = vmatpush3.msra.mxu1 %v1652_v56  ;;  %2152 = vmatpush3.msra.mxu0 %v1684_v57 }
 0x313   : > { %2118 = vmatprep.subr.mxu1 %v1667_v58  ;;  %2153 = vmatprep.subr.mxu0 %v1699_v59  ;;  %v1639_v59 = vld [vmem:[%s3097_s7 + $0xe8] sm:$0xff] }
 0x314   : > { %2119 = vmatpush3.msra.mxu1 %v1651_v61  ;;  %2154 = vmatpush3.msra.mxu0 %v1683_v60  ;;  %v1623_v61 = vld [vmem:[%s3097_s7 + $0x68] sm:$0xff]  ;;  %v1638_v60 = vld [vmem:[%s3097_s7 + $0xe0] sm:$0xff] }
 0x315   : > { %2120 = vmatprep.subr.mxu1 %v1666_v62  ;;  %2155 = vmatprep.subr.mxu0 %v1698_v63  ;;  %v1622_v62 = vld [vmem:[%s3097_s7 + $0x60] sm:$0xff]  ;;  %v1621_v63 = vld [vmem:[%s3097_s7 + $0x58] sm:$0xff] }
 0x316   : > { %2121 = vmatpush3.msra.mxu1 %v1650_v0  ;;  %2156 = vmatpush3.msra.mxu0 %v1682_v1  ;;  %v1636_v0 = vld [vmem:[%s3097_s7 + $0xd0] sm:$0xff] }
 0x317   : > { %2122 = vmatprep.subr.mxu1 %v1665_v3  ;;  %2157 = vmatprep.subr.mxu0 %v1697_v4  ;;  %v1620_v1 = vld [vmem:[%s3097_s7 + $0x50] sm:$0xff]  ;;  %v1635_v3 = vld [vmem:[%s3097_s7 + $0xc8] sm:$0xff] }
 0x318   : > { %2123 = vmatpush3.msra.mxu1 %v1649_v8  ;;  %2158 = vmatpush3.msra.mxu0 %v1681_v9  ;;  %v1619_v4 = vld [vmem:[%s3097_s7 + $0x48] sm:$0xff]  ;;  %v1634_v8 = vld [vmem:[%s3097_s7 + $0xc0] sm:$0xff] }
 0x319   : > { %2124 = vmatprep.subr.mxu1 %v1664_v10  ;;  %2159 = vmatprep.subr.mxu0 %v1696_v11  ;;  %v1618_v9 = vld [vmem:[%s3097_s7 + $0x40] sm:$0xff]  ;;  %v1633_v10 = vld [vmem:[%s3097_s7 + $0xb8] sm:$0xff] }
 0x31a   : > { %2125 = vmatpush3.msra.mxu1 %v1648_v12  ;;  %2160 = vmatpush3.msra.mxu0 %v1680_v13  ;;  %v1617_v11 = vld [vmem:[%s3097_s7 + $0x38] sm:$0xff]  ;;  %v1632_v12 = vld [vmem:[%s3097_s7 + $0xb0] sm:$0xff] }
 0x31b   : > { %2126 = vmatprep.subr.mxu1 %v1663_v15  ;;  %2161 = vmatprep.subr.mxu0 %v1695_v16  ;;  %v1616_v13 = vld [vmem:[%s3097_s7 + $0x30] sm:$0xff]  ;;  %v1631_v15 = vld [vmem:[%s3097_s7 + $0xa8] sm:$0xff] }
 0x31c   : > { %2127 = vmatpush3.msra.mxu1 %v1647_v19  ;;  %2162 = vmatpush3.msra.mxu0 %v1679_v20  ;;  %v1615_v16 = vld [vmem:[%s3097_s7 + $0x28] sm:$0xff]  ;;  %v1630_v19 = vld [vmem:[%s3097_s7 + $0xa0] sm:$0xff] }
 0x31d   : > { %2128 = vmatprep.subr.mxu1 %v1662_v22  ;;  %2163 = vmatprep.subr.mxu0 %v1694_v23  ;;  %v1614_v20 = vld [vmem:[%s3097_s7 + $0x20] sm:$0xff]  ;;  %v1629_v22 = vld [vmem:[%s3097_s7 + $0x98] sm:$0xff] }
 0x31e   : > { %2129 = vmatpush3.msra.mxu1 %v1646_v24  ;;  %2164 = vmatpush3.msra.mxu0 %v1678_v25  ;;  %v1613_v23 = vld [vmem:[%s3097_s7 + $0x18] sm:$0xff]  ;;  %v1628_v24 = vld [vmem:[%s3097_s7 + $0x90] sm:$0xff] }
 0x31f   : > { %2130 = vmatprep.subr.mxu1 %v1661_v26  ;;  %2165 = vmatprep.subr.mxu0 %v1693_v29  ;;  %v1612_v25 = vld [vmem:[%s3097_s7 + $0x10] sm:$0xff]  ;;  %v1627_v26 = vld [vmem:[%s3097_s7 + $0x88] sm:$0xff]  ;;  %v1626_v29 = vld [vmem:[%s3097_s7 + $0x80] sm:$0xff] }
 0x320   : > { %2131 = vmatpush3.msra.mxu1 %v1645_v27  ;;  %2166 = vmatpush3.msra.mxu0 %v1677_v31  ;;  %v1611_v27 = vld [vmem:[%s3097_s7 + $0x8] sm:$0xff] }
 0x321   : > { %2132 = vmatprep.subr.mxu1 %v1660_v30  ;;  %2167 = vmatprep.subr.mxu0 %v1692_v33  ;;  %v1610_v30 = vld [vmem:[%s3097_s7] sm:$0xff] }
 0x322   : > { %2133 = vmatpush3.msra.mxu1 %v1644_v32  ;;  %2168 = vmatpush3.msra.mxu0 %v1676_v6 }
 0x323   : > { %2134 = vmatprep.subr.mxu1 %v1659_v34  ;;  %2169 = vmatprep.subr.mxu0 %v1691_v36 }
 0x324   : > { %2135 = vmatpush3.msra.mxu1 %v1643_v21  ;;  %2170 = vmatpush3.msra.mxu0 %v1675_v28 }
 0x325   : > { %2136 = vmatprep.subr.mxu1 %v1658_v14  ;;  %2171 = vmatprep.subr.mxu0 %v1690_v38  ;;  %v1916_v38 = vld [vmem:[%s3099_s9] sm:$0x1] }
 0x326   : > { %2137 = vmatpush3.msra.mxu1 %v1642_v37  ;;  %2172 = vmatpush3.msra.mxu0 %v1674_v35 }
 0x327   : > { %2176 = vmatprep.subr.mxu1 %v1641_v39 }
 0x3c7   : > { %v1530_v47 = vpop.f32.mrf.mxu1  ;;  %v1601_v48 = vpop.f32.mrf.mxu0 }
 0x3c8   : > { %v1531_v49 = vadd.f32 %v1530_v47, %v1447_v43  ;;  %v1602_v50 = vadd.f32 %v1601_v48, %v1455_v44 }
 0x3c9   : > { %v1532_v51 = vpop.f32.mrf.mxu1  ;;  %v1603_v52 = vpop.f32.mrf.mxu0 }
 0x3ca   : > { %v1533_v53 = vadd.f32 %v1532_v51, %v1451_v45  ;;  %v1604_v54 = vadd.f32 %v1603_v52, %v1459_v46  ;;  %v1606_v57 = vmax.f32 %v1531_v49, 0.0  ;;  %v1608_v58 = vmax.f32 %v1602_v50, 0.0 }
 0x3cc   : > { %v1607_v55 = vmax.f32 %v1533_v53, 0.0  ;;  %v1609_v56 = vmax.f32 %v1604_v54, 0.0 }
 0x3ce   : > { %1770 = vmatprep.mubr.f32.mxu1 %v1607_v55  ;;  %1840 = vmatprep.mubr.f32.mxu0 %v1609_v56 }
 0x3cf   : > { %1771 = vmatmul.mubr.f32.vlgmr.msra.gmra.mxu1 %v1606_v57  ;;  %1841 = vmatmul.mubr.f32.vlgmr.msra.gmra.mxu0 %v1608_v58 }
 0x3d0   : > { %2177 = vmatpush3.msra.mxu1 %v1625_v2  ;;  %1910 = vmatprep.mubr.f32.mxu1 %v2935_v17  ;;  %v1637_v17 = vld [vmem:[%s3097_s7 + $0xd8] sm:$0xff] }
 0x3d1   : > { %2178 = vmatprep.subr.mxu1 %v1640_v5 }
 0x3d2   : > { %2179 = vmatpush3.msra.mxu1 %v1624_v7 }
 0x3d3   : > { %2180 = vmatprep.subr.mxu1 %v1639_v59 }
 0x3d4   : > { %2181 = vmatpush3.msra.mxu1 %v1623_v61 }
 0x3d5   : > { %2182 = vmatprep.subr.mxu1 %v1638_v60 }
 0x3d6   : > { %2183 = vmatpush3.msra.mxu1 %v1622_v62 }
 0x3d7   : > { %2184 = vmatprep.subr.mxu1 %v1637_v17 }
 0x3d8   : > { %2185 = vmatpush3.msra.mxu1 %v1621_v63 }
 0x3d9   : > { %2186 = vmatprep.subr.mxu1 %v1636_v0 }
 0x3da   : > { %2187 = vmatpush3.msra.mxu1 %v1620_v1 }
 0x3db   : > { %2188 = vmatprep.subr.mxu1 %v1635_v3 }
 0x3dc   : > { %2189 = vmatpush3.msra.mxu1 %v1619_v4 }
 0x3dd   : > { %2190 = vmatprep.subr.mxu1 %v1634_v8 }
 0x3de   : > { %2191 = vmatpush3.msra.mxu1 %v1618_v9 }
 0x3df   : > { %2192 = vmatprep.subr.mxu1 %v1633_v10 }
 0x3e0   : > { %2193 = vmatpush3.msra.mxu1 %v1617_v11 }
 0x3e1   : > { %2194 = vmatprep.subr.mxu1 %v1632_v12 }
 0x3e2   : > { %2195 = vmatpush3.msra.mxu1 %v1616_v13 }
 0x3e3   : > { %2196 = vmatprep.subr.mxu1 %v1631_v15 }
 0x3e4   : > { %2197 = vmatpush3.msra.mxu1 %v1615_v16 }
 0x3e5   : > { %2198 = vmatprep.subr.mxu1 %v1630_v19 }
 0x3e6   : > { %2199 = vmatpush3.msra.mxu1 %v1614_v20 }
 0x3e7   : > { %2200 = vmatprep.subr.mxu1 %v1629_v22 }
 0x3e8   : > { %2201 = vmatpush3.msra.mxu1 %v1613_v23 }
 0x3e9   : > { %2202 = vmatprep.subr.mxu1 %v1628_v24 }
 0x3ea   : > { %2203 = vmatpush3.msra.mxu1 %v1612_v25 }
 0x3eb   : > { %2204 = vmatprep.subr.mxu1 %v1627_v26 }
 0x3ec   : > { %2205 = vmatpush3.msra.mxu1 %v1611_v27 }
 0x3ed   : > { %2206 = vmatprep.subr.mxu1 %v1626_v29 }
 0x3ee   : > { %2207 = vmatpush3.msra.mxu1 %v1610_v30 }
 0x3ef   : > { %1911 = vmatmul.mubr.f32.vlgmr.msra.gmra.mxu1 %v2937_v18 }
 0x48f   : > { %v2138_v31 = vpop.f32.mrf.mxu1  ;;  %v2173_v32 = vpop.f32.mrf.mxu0 }
 0x491   : > { %v2139_v33 = vpop.f32.mrf.mxu1  ;;  %v2174_v34 = vpop.f32.mrf.mxu0 }
 0x492   : > { %v2140_v6 = vadd.f32 %v2139_v33, %v2138_v31  ;;  %v2175_v21 = vadd.f32 %v2174_v34, %v2173_v32 }
 0x494   : > { %v1843_v28 = vadd.f32 %v2175_v21, %v2140_v6 }
 0x4af   : > { %v2208_v36 = vpop.f32.mrf.mxu1 }
 0x4b1   : > { %v2209_v14 = vpop.f32.mrf.mxu1 }
 0x4b2   : > { %v2210_v37 = vadd.f32 %v2209_v14, %v2208_v36 }
 0x4b4   : > { %v1913_v18 = vadd.f32 %v2210_v37, %v1843_v28 }
 0x4b6   : > { %v1917_v35 = vadd.f32 %v1916_v38, %v1913_v18 }
 0x4b8   : > { %1918 = vst [vmem:[%s443_s25] sm:$0x1] %v1917_v35 }
 0x4b9   : > { %2468 = shalt.err (!%p2465_p7)
}
 0x4ba   : > { %s2469_s17 = scalar_lea.hbm %s1930_s22, 16  ;;  %s2473_s11 = scalar_lea.hbm %s3100_s10, 32 }
 0x4bb   : > { %p2470_p9 = scmp.ne.s32.totalorder %s1930_s22, %s2469_s17  ;;  %p2474_p10 = scmp.lt.s32.totalorder %s1930_s22, %s3100_s10 }
 0x4bc   : > { %p2475_p2 = scmp.lt.s32.totalorder %s2473_s11, %s2469_s17 }
 0x4bd   : > { %p2471_p12 = pnand %p2470_p9, %p3122_p5 }
 0x4be   : > { %p2476_p13 = por %p2475_p2, %p2474_p10 }
 0x4bf   : > { %p2472_p1 = pneg %p2471_p12 }
 0x4c1   : > { %p2477_p0 = pnand %p2476_p13, %p2472_p1 }
 0x4c3   : > { %2480 = shalt.err (!%p2477_p0)
}
 0x4c4   : > { %2231 = dma.vmem_to_hbm [thread:$0]  (%p3122_p5), %s1933_s26, 16, %s1930_s22, %s1920_s21  }
 0x4c5 PF: > { %s3123_s25 = sld [smem:[#allocation20_spill]]  ;;  %p2263_p8 = scmp.ge.s32.totalorder %s2543_s18, 2 }
 0x4c6   : > { %s1944_s20 = sand.u32 1, %s2523_s13  }
 0x4c7   : > { %s1945_s28 = scalar_lea.sflag [#allocation5], %s1944_s20 }
 0x4cb   : > { %p3124_p4 = scmp.ne.s32.totalorder %s3123_s25, 0 }
 0x4cd   : > { %p2250_p11 = pnand %p2263_p8, %p3124_p4 }
 0x4cf   : > { %p2251_p3 = pneg %p2250_p11 }
 0x4d1   : > { %2518 = dma.done.wait (%p2251_p3), %s1945_s28, 16  }
 0x4d2   : > { %2520 = vsyncadd (%p2251_p3), %s1945_s28, 4294967280  ;;  %s26_s18 = sadd.s32 1, %s2543_s18   ;;  %s3125_s30 = sld [smem:[#allocation17_spill]] }
 0x4d3   : > { %p23_p6 = scmp.ge.s32.totalorder %s26_s18, 4   ;;  %s3126_s15 = sld [smem:[#allocation21_spill]] }
 0x4d4   : > { %s3127_s16 = sld [smem:[#allocation18_spill]]  ;;  %s3129_s13 = smov %s2527_s14 }
 0x4d5   : > { %s3128_s17 = sld [smem:[#allocation19_spill]]  ;;  %25 = sbr.rel (!%p23_p6) target bundleno = 7 (0x7), region = 124 }
 0x4d8   : > { %s3130_s14 = smov %s3125_s30 }
 0x4da   :  { %1949 = vsyncpa [#allocation4], 1 }
 0x4db   :  { %1951 = vsyncpa [#allocation4 + $0x1], 1 }
 0x4dc   :  { %1952 = vsyncpa [#allocation7], 1 }
 0x4dd   :  { %1953 = vsyncpa [#allocation10], 1 }
 0x4de   :  { %1954 = vsyncpa [#allocation5], 1 }
 0x4df   :  { %1956 = vsyncpa [#allocation5 + $0x1], 1 }

</bundles_post_ra>
